<compile_context>
chip_gen: v6e
topology: v6e:2x2x1
jax: 0.10.0
libtpu: 0.0.40
codegen_flags: <defaults>
</compile_context>

<pallas_src>
import functools

import jax
import jax.numpy as jnp
from jax import lax
from jax.experimental import pallas as pl
from jax.experimental.pallas import tpu as pltpu


def _matmul_nt(a, b):
    """a @ b.T (PyTorch Linear convention) without emitting a transpose op."""
    return lax.dot_general(a, b, (((1,), (1,)), ((), ())),
                           preferred_element_type=jnp.float32)


def lstm_kernel(x2d_ref, wih_ref, whh_ref, bih_ref, bhh_ref, wfc_ref, bfc_ref,
                out_ref, *, batch, seq_len):
    """Fused LSTM forward.

    x2d_ref : (B*S, E)  batch_first inputs, flattened (free reshape)
    wih_ref : (4H, E)   PyTorch weight_ih_l0
    whh_ref : (4H, H)   PyTorch weight_hh_l0
    bih_ref : (1, 4H)   bias_ih_l0
    bhh_ref : (1, 4H)   bias_hh_l0
    wfc_ref : (C, H)    classifier weight
    bfc_ref : (1, C)    classifier bias
    out_ref : (B, C)    logits
    """
    B, S = batch, seq_len
    G = wih_ref.shape[0]            # 4H
    H = whh_ref.shape[1]

    # ---- one-shot input projection for all timesteps (single MXU matmul) ----
    bias = bih_ref[...] + bhh_ref[...]                       # (1, 4H)
    pre = _matmul_nt(x2d_ref[...], wih_ref[...]) + bias      # (B*S, 4H)
    pre = pre.reshape(B, S, G)      # tile-aligned split (S == sublane tile)

    # ---- hoisted loop invariants ----
    whh_t = whh_ref[...].T                                   # (H, 4H), once
    lane = lax.broadcasted_iota(jnp.int32, (1, G), 1)
    is_g = (lane >= 2 * H) & (lane < 3 * H)                  # g-gate (tanh) lanes
    # sigmoid(z) = 0.5*(tanh(z/2)+1)  ->  one tanh pass covers all four gates.
    gate_scale = jnp.where(is_g, 1.0, 0.5).astype(jnp.float32)   # (1, 4H)
    gate_shift = jnp.where(is_g, 0.0, 0.5).astype(jnp.float32)   # (1, 4H)

    h = jnp.zeros((B, H), jnp.float32)
    c = jnp.zeros((B, H), jnp.float32)
    for t in range(S):              # static, fully inlined; state stays in vregs
        gates = pre[:, t, :] + jnp.dot(h, whh_t,
                                       preferred_element_type=jnp.float32)
        act = jnp.tanh(gates * gate_scale) * gate_scale + gate_shift
        i_g = act[:, 0 * H:1 * H]
        f_g = act[:, 1 * H:2 * H]
        g_g = act[:, 2 * H:3 * H]
        o_g = act[:, 3 * H:4 * H]
        c = f_g * c + i_g * g_g
        h = o_g * jnp.tanh(c)

    # dropout is identity in eval mode
    # TODO(synk): training-mode dropout (torch.nn.Dropout) not implemented.
    logits = _matmul_nt(h, wfc_ref[...]) + bfc_ref[...]
    # (B, C) = (2, 2) is a lane-sparse masked store, but it executes once.
    out_ref[...] = logits.astype(out_ref.dtype)


def lstm_forward(x, params):
    """x: (batch, seq, embed) float32 — PyTorch batch_first convention."""
    B, S, E = x.shape
    w_ih, w_hh, b_ih, b_hh, w_fc, b_fc = (
        params["w_ih"], params["w_hh"], params["b_ih"],
        params["b_hh"], params["w_fc"], params["b_fc"])
    G = w_ih.shape[0]               # 4H
    C = w_fc.shape[0]

    kernel = functools.partial(lstm_kernel, batch=B, seq_len=S)
    vmem = pl.BlockSpec(memory_space=pltpu.MemorySpace.VMEM)

    return pl.pallas_call(
        kernel,
        out_shape=jax.ShapeDtypeStruct((B, C), jnp.float32),
        in_specs=[vmem] * 7,
        out_specs=vmem,
    )(x.reshape(B * S, E),                 # free reshape (contiguous, batch_first)
      w_ih, w_hh,
      b_ih.reshape(1, G), b_hh.reshape(1, G),
      w_fc, b_fc.reshape(1, C))


def lstm_reference(x, params):
    """Pure-JAX reference matching torch.nn.LSTM + Linear (eval mode)."""
    w_ih, w_hh, b_ih, b_hh, w_fc, b_fc = (
        params["w_ih"], params["w_hh"], params["b_ih"],
        params["b_hh"], params["w_fc"], params["b_fc"])
    B, S, E = x.shape
    H = w_hh.shape[1]

    def step(carry, x_t):
        h, c = carry
        gates = x_t @ w_ih.T + h @ w_hh.T + b_ih + b_hh
        i = jax.nn.sigmoid(gates[:, 0 * H:1 * H])
        f = jax.nn.sigmoid(gates[:, 1 * H:2 * H])
        g = jnp.tanh(gates[:, 2 * H:3 * H])
        o = jax.nn.sigmoid(gates[:, 3 * H:4 * H])
        c = f * c + i * g
        h = o * jnp.tanh(c)
        return (h, c), h

    h0 = jnp.zeros((B, H), jnp.float32)
    c0 = jnp.zeros((B, H), jnp.float32)
    (h_last, _), _ = jax.lax.scan(step, (h0, c0), jnp.transpose(x, (1, 0, 2)))
    return h_last @ w_fc.T + b_fc


def make_params(key, embedding_dim, hidden_dim, num_classes):
    """Deterministic init mimicking PyTorch's uniform(-1/sqrt(H), 1/sqrt(H))."""
    ks = jax.random.split(key, 6)
    s = 1.0 / jnp.sqrt(hidden_dim)
    return {
        "w_ih": jax.random.uniform(ks[0], (4 * hidden_dim, embedding_dim),
                                   jnp.float32, -s, s),
        "w_hh": jax.random.uniform(ks[1], (4 * hidden_dim, hidden_dim),
                                   jnp.float32, -s, s),
        "b_ih": jax.random.uniform(ks[2], (4 * hidden_dim,), jnp.float32, -s, s),
        "b_hh": jax.random.uniform(ks[3], (4 * hidden_dim,), jnp.float32, -s, s),
        "w_fc": jax.random.uniform(ks[4], (num_classes, hidden_dim),
                                   jnp.float32, -s, s),
        "b_fc": jax.random.uniform(ks[5], (num_classes,), jnp.float32, -s, s),
    }


if __name__ == "__main__":
    BATCH, SEQ, EMBED, HIDDEN, CLASSES = 2, 8, 50, 32, 2

    key = jax.random.PRNGKey(0)
    k_x, k_p = jax.random.split(key)
    x = jax.random.normal(k_x, (BATCH, SEQ, EMBED), jnp.float32)
    params = make_params(k_p, EMBED, HIDDEN, CLASSES)

    logits = lstm_forward(x, params)
    logits = jax.block_until_ready(logits)

    ref = lstm_reference(x, params)
    assert logits.shape == (BATCH, CLASSES)
    assert jnp.allclose(logits, ref, atol=1e-4, rtol=1e-4), (
        f"mismatch: {logits} vs {ref}")

    print("KERNEL_OK")
</pallas_src>

<mosaic_0001>
module attributes {stable_mosaic.version = 11 : i64} {
  func.func @lstm_kernel(%arg0: memref<16x50xf32, #tpu.memory_space<vmem>>, %arg1: memref<128x50xf32, #tpu.memory_space<vmem>>, %arg2: memref<128x32xf32, #tpu.memory_space<vmem>>, %arg3: memref<1x128xf32, #tpu.memory_space<vmem>>, %arg4: memref<1x128xf32, #tpu.memory_space<vmem>>, %arg5: memref<2x32xf32, #tpu.memory_space<vmem>>, %arg6: memref<1x2xf32, #tpu.memory_space<vmem>>, %arg7: memref<2x2xf32, #tpu.memory_space<vmem>>) attributes {dimension_semantics = [], scalar_prefetch = 0 : i64, scratch_operands = 0 : i64, tpu.core_type = #tpu.core_type<tc>} {
    %c0 = arith.constant 0 : index
    %c0_0 = arith.constant 0 : index
    %0 = vector.load %arg3[%c0, %c0_0] : memref<1x128xf32, #tpu.memory_space<vmem>>, vector<1x128xf32>
    %c0_1 = arith.constant 0 : index
    %c0_2 = arith.constant 0 : index
    %1 = vector.load %arg4[%c0_1, %c0_2] : memref<1x128xf32, #tpu.memory_space<vmem>>, vector<1x128xf32>
    %2 = arith.addf %0, %1 : vector<1x128xf32>
    %c0_3 = arith.constant 0 : index
    %c0_4 = arith.constant 0 : index
    %3 = vector.load %arg0[%c0_3, %c0_4] : memref<16x50xf32, #tpu.memory_space<vmem>>, vector<16x50xf32>
    %c0_5 = arith.constant 0 : index
    %c0_6 = arith.constant 0 : index
    %4 = vector.load %arg1[%c0_5, %c0_6] : memref<128x50xf32, #tpu.memory_space<vmem>>, vector<128x50xf32>
    %cst = arith.constant dense<0.000000e+00> : vector<16x128xf32>
    %5 = tpu.matmul %3, %4, %cst {dimension_numbers = #tpu.dot_dimension_numbers<[1], [1], [0], [0], [0, 0, 1, 0], [], []>} : vector<16x50xf32>, vector<128x50xf32>, vector<16x128xf32> -> vector<16x128xf32>
    %6 = vector.broadcast %2 : vector<1x128xf32> to vector<16x128xf32>
    %7 = arith.addf %5, %6 : vector<16x128xf32>
    %8 = vector.shape_cast %7 : vector<16x128xf32> to vector<2x8x128xf32>
    %c0_7 = arith.constant 0 : index
    %c0_8 = arith.constant 0 : index
    %9 = vector.load %arg2[%c0_7, %c0_8] : memref<128x32xf32, #tpu.memory_space<vmem>>, vector<128x32xf32>
    %10 = tpu.transpose %9, [1, 0] : vector<128x32xf32> -> vector<32x128xf32>
    %11 = tpu.iota {dimensions = array<i32: 1>} : vector<1x128xi32>
    %c64_i32 = arith.constant 64 : i32
    %12 = vector.broadcast %c64_i32 : i32 to vector<1x128xi32>
    %13 = arith.cmpi sge, %11, %12 : vector<1x128xi32>
    %c96_i32 = arith.constant 96 : i32
    %14 = vector.broadcast %c96_i32 : i32 to vector<1x128xi32>
    %15 = arith.cmpi slt, %11, %14 : vector<1x128xi32>
    %16 = arith.andi %13, %15 : vector<1x128xi1>
    %cst_9 = arith.constant 1.000000e+00 : f32
    %cst_10 = arith.constant 5.000000e-01 : f32
    %17 = vector.broadcast %cst_9 : f32 to vector<1x128xf32>
    %18 = vector.broadcast %cst_10 : f32 to vector<1x128xf32>
    %19 = arith.select %16, %17, %18 : vector<1x128xi1>, vector<1x128xf32>
    %cst_11 = arith.constant 0.000000e+00 : f32
    %cst_12 = arith.constant 5.000000e-01 : f32
    %20 = vector.broadcast %cst_11 : f32 to vector<1x128xf32>
    %21 = vector.broadcast %cst_12 : f32 to vector<1x128xf32>
    %22 = arith.select %16, %20, %21 : vector<1x128xi1>, vector<1x128xf32>
    %cst_13 = arith.constant 0.000000e+00 : f32
    %23 = vector.broadcast %cst_13 : f32 to vector<2x32xf32>
    %cst_14 = arith.constant 0.000000e+00 : f32
    %24 = vector.broadcast %cst_14 : f32 to vector<2x32xf32>
    %25 = vector.extract_strided_slice %8 {offsets = [0, 0, 0], sizes = [2, 1, 128], strides = [1, 1, 1]} : vector<2x8x128xf32> to vector<2x1x128xf32>
    %26 = vector.shape_cast %25 : vector<2x1x128xf32> to vector<2x128xf32>
    %cst_15 = arith.constant dense<0.000000e+00> : vector<2x128xf32>
    %27 = tpu.matmul %23, %10, %cst_15 {dimension_numbers = #tpu.dot_dimension_numbers<[1], [0], [0], [1], [0, 0, 1, 1], [], []>} : vector<2x32xf32>, vector<32x128xf32>, vector<2x128xf32> -> vector<2x128xf32>
    %28 = arith.addf %26, %27 : vector<2x128xf32>
    %29 = vector.broadcast %19 : vector<1x128xf32> to vector<2x128xf32>
    %30 = arith.mulf %28, %29 : vector<2x128xf32>
    %31 = math.tanh %30 : vector<2x128xf32>
    %32 = vector.broadcast %19 : vector<1x128xf32> to vector<2x128xf32>
    %33 = arith.mulf %31, %32 : vector<2x128xf32>
    %34 = vector.broadcast %22 : vector<1x128xf32> to vector<2x128xf32>
    %35 = arith.addf %33, %34 : vector<2x128xf32>
    %36 = vector.extract_strided_slice %35 {offsets = [0, 0], sizes = [2, 32], strides = [1, 1]} : vector<2x128xf32> to vector<2x32xf32>
    %37 = vector.extract_strided_slice %35 {offsets = [0, 32], sizes = [2, 32], strides = [1, 1]} : vector<2x128xf32> to vector<2x32xf32>
    %38 = vector.extract_strided_slice %35 {offsets = [0, 64], sizes = [2, 32], strides = [1, 1]} : vector<2x128xf32> to vector<2x32xf32>
    %39 = vector.extract_strided_slice %35 {offsets = [0, 96], sizes = [2, 32], strides = [1, 1]} : vector<2x128xf32> to vector<2x32xf32>
    %40 = arith.mulf %37, %24 : vector<2x32xf32>
    %41 = arith.mulf %36, %38 : vector<2x32xf32>
    %42 = arith.addf %40, %41 : vector<2x32xf32>
    %43 = math.tanh %42 : vector<2x32xf32>
    %44 = arith.mulf %39, %43 : vector<2x32xf32>
    %45 = vector.extract_strided_slice %8 {offsets = [0, 1, 0], sizes = [2, 1, 128], strides = [1, 1, 1]} : vector<2x8x128xf32> to vector<2x1x128xf32>
    %46 = vector.shape_cast %45 : vector<2x1x128xf32> to vector<2x128xf32>
    %cst_16 = arith.constant dense<0.000000e+00> : vector<2x128xf32>
    %47 = tpu.matmul %44, %10, %cst_16 {dimension_numbers = #tpu.dot_dimension_numbers<[1], [0], [0], [1], [0, 0, 1, 1], [], []>} : vector<2x32xf32>, vector<32x128xf32>, vector<2x128xf32> -> vector<2x128xf32>
    %48 = arith.addf %46, %47 : vector<2x128xf32>
    %49 = vector.broadcast %19 : vector<1x128xf32> to vector<2x128xf32>
    %50 = arith.mulf %48, %49 : vector<2x128xf32>
    %51 = math.tanh %50 : vector<2x128xf32>
    %52 = vector.broadcast %19 : vector<1x128xf32> to vector<2x128xf32>
    %53 = arith.mulf %51, %52 : vector<2x128xf32>
    %54 = vector.broadcast %22 : vector<1x128xf32> to vector<2x128xf32>
    %55 = arith.addf %53, %54 : vector<2x128xf32>
    %56 = vector.extract_strided_slice %55 {offsets = [0, 0], sizes = [2, 32], strides = [1, 1]} : vector<2x128xf32> to vector<2x32xf32>
    %57 = vector.extract_strided_slice %55 {offsets = [0, 32], sizes = [2, 32], strides = [1, 1]} : vector<2x128xf32> to vector<2x32xf32>
    %58 = vector.extract_strided_slice %55 {offsets = [0, 64], sizes = [2, 32], strides = [1, 1]} : vector<2x128xf32> to vector<2x32xf32>
    %59 = vector.extract_strided_slice %55 {offsets = [0, 96], sizes = [2, 32], strides = [1, 1]} : vector<2x128xf32> to vector<2x32xf32>
    %60 = arith.mulf %57, %42 : vector<2x32xf32>
    %61 = arith.mulf %56, %58 : vector<2x32xf32>
    %62 = arith.addf %60, %61 : vector<2x32xf32>
    %63 = math.tanh %62 : vector<2x32xf32>
    %64 = arith.mulf %59, %63 : vector<2x32xf32>
    %65 = vector.extract_strided_slice %8 {offsets = [0, 2, 0], sizes = [2, 1, 128], strides = [1, 1, 1]} : vector<2x8x128xf32> to vector<2x1x128xf32>
    %66 = vector.shape_cast %65 : vector<2x1x128xf32> to vector<2x128xf32>
    %cst_17 = arith.constant dense<0.000000e+00> : vector<2x128xf32>
    %67 = tpu.matmul %64, %10, %cst_17 {dimension_numbers = #tpu.dot_dimension_numbers<[1], [0], [0], [1], [0, 0, 1, 1], [], []>} : vector<2x32xf32>, vector<32x128xf32>, vector<2x128xf32> -> vector<2x128xf32>
    %68 = arith.addf %66, %67 : vector<2x128xf32>
    %69 = vector.broadcast %19 : vector<1x128xf32> to vector<2x128xf32>
    %70 = arith.mulf %68, %69 : vector<2x128xf32>
    %71 = math.tanh %70 : vector<2x128xf32>
    %72 = vector.broadcast %19 : vector<1x128xf32> to vector<2x128xf32>
    %73 = arith.mulf %71, %72 : vector<2x128xf32>
    %74 = vector.broadcast %22 : vector<1x128xf32> to vector<2x128xf32>
    %75 = arith.addf %73, %74 : vector<2x128xf32>
    %76 = vector.extract_strided_slice %75 {offsets = [0, 0], sizes = [2, 32], strides = [1, 1]} : vector<2x128xf32> to vector<2x32xf32>
    %77 = vector.extract_strided_slice %75 {offsets = [0, 32], sizes = [2, 32], strides = [1, 1]} : vector<2x128xf32> to vector<2x32xf32>
    %78 = vector.extract_strided_slice %75 {offsets = [0, 64], sizes = [2, 32], strides = [1, 1]} : vector<2x128xf32> to vector<2x32xf32>
    %79 = vector.extract_strided_slice %75 {offsets = [0, 96], sizes = [2, 32], strides = [1, 1]} : vector<2x128xf32> to vector<2x32xf32>
    %80 = arith.mulf %77, %62 : vector<2x32xf32>
    %81 = arith.mulf %76, %78 : vector<2x32xf32>
    %82 = arith.addf %80, %81 : vector<2x32xf32>
    %83 = math.tanh %82 : vector<2x32xf32>
    %84 = arith.mulf %79, %83 : vector<2x32xf32>
    %85 = vector.extract_strided_slice %8 {offsets = [0, 3, 0], sizes = [2, 1, 128], strides = [1, 1, 1]} : vector<2x8x128xf32> to vector<2x1x128xf32>
    %86 = vector.shape_cast %85 : vector<2x1x128xf32> to vector<2x128xf32>
    %cst_18 = arith.constant dense<0.000000e+00> : vector<2x128xf32>
    %87 = tpu.matmul %84, %10, %cst_18 {dimension_numbers = #tpu.dot_dimension_numbers<[1], [0], [0], [1], [0, 0, 1, 1], [], []>} : vector<2x32xf32>, vector<32x128xf32>, vector<2x128xf32> -> vector<2x128xf32>
    %88 = arith.addf %86, %87 : vector<2x128xf32>
    %89 = vector.broadcast %19 : vector<1x128xf32> to vector<2x128xf32>
    %90 = arith.mulf %88, %89 : vector<2x128xf32>
    %91 = math.tanh %90 : vector<2x128xf32>
    %92 = vector.broadcast %19 : vector<1x128xf32> to vector<2x128xf32>
    %93 = arith.mulf %91, %92 : vector<2x128xf32>
    %94 = vector.broadcast %22 : vector<1x128xf32> to vector<2x128xf32>
    %95 = arith.addf %93, %94 : vector<2x128xf32>
    %96 = vector.extract_strided_slice %95 {offsets = [0, 0], sizes = [2, 32], strides = [1, 1]} : vector<2x128xf32> to vector<2x32xf32>
    %97 = vector.extract_strided_slice %95 {offsets = [0, 32], sizes = [2, 32], strides = [1, 1]} : vector<2x128xf32> to vector<2x32xf32>
    %98 = vector.extract_strided_slice %95 {offsets = [0, 64], sizes = [2, 32], strides = [1, 1]} : vector<2x128xf32> to vector<2x32xf32>
    %99 = vector.extract_strided_slice %95 {offsets = [0, 96], sizes = [2, 32], strides = [1, 1]} : vector<2x128xf32> to vector<2x32xf32>
    %100 = arith.mulf %97, %82 : vector<2x32xf32>
    %101 = arith.mulf %96, %98 : vector<2x32xf32>
    %102 = arith.addf %100, %101 : vector<2x32xf32>
    %103 = math.tanh %102 : vector<2x32xf32>
    %104 = arith.mulf %99, %103 : vector<2x32xf32>
    %105 = vector.extract_strided_slice %8 {offsets = [0, 4, 0], sizes = [2, 1, 128], strides = [1, 1, 1]} : vector<2x8x128xf32> to vector<2x1x128xf32>
    %106 = vector.shape_cast %105 : vector<2x1x128xf32> to vector<2x128xf32>
    %cst_19 = arith.constant dense<0.000000e+00> : vector<2x128xf32>
    %107 = tpu.matmul %104, %10, %cst_19 {dimension_numbers = #tpu.dot_dimension_numbers<[1], [0], [0], [1], [0, 0, 1, 1], [], []>} : vector<2x32xf32>, vector<32x128xf32>, vector<2x128xf32> -> vector<2x128xf32>
    %108 = arith.addf %106, %107 : vector<2x128xf32>
    %109 = vector.broadcast %19 : vector<1x128xf32> to vector<2x128xf32>
    %110 = arith.mulf %108, %109 : vector<2x128xf32>
    %111 = math.tanh %110 : vector<2x128xf32>
    %112 = vector.broadcast %19 : vector<1x128xf32> to vector<2x128xf32>
    %113 = arith.mulf %111, %112 : vector<2x128xf32>
    %114 = vector.broadcast %22 : vector<1x128xf32> to vector<2x128xf32>
    %115 = arith.addf %113, %114 : vector<2x128xf32>
    %116 = vector.extract_strided_slice %115 {offsets = [0, 0], sizes = [2, 32], strides = [1, 1]} : vector<2x128xf32> to vector<2x32xf32>
    %117 = vector.extract_strided_slice %115 {offsets = [0, 32], sizes = [2, 32], strides = [1, 1]} : vector<2x128xf32> to vector<2x32xf32>
    %118 = vector.extract_strided_slice %115 {offsets = [0, 64], sizes = [2, 32], strides = [1, 1]} : vector<2x128xf32> to vector<2x32xf32>
    %119 = vector.extract_strided_slice %115 {offsets = [0, 96], sizes = [2, 32], strides = [1, 1]} : vector<2x128xf32> to vector<2x32xf32>
    %120 = arith.mulf %117, %102 : vector<2x32xf32>
    %121 = arith.mulf %116, %118 : vector<2x32xf32>
    %122 = arith.addf %120, %121 : vector<2x32xf32>
    %123 = math.tanh %122 : vector<2x32xf32>
    %124 = arith.mulf %119, %123 : vector<2x32xf32>
    %125 = vector.extract_strided_slice %8 {offsets = [0, 5, 0], sizes = [2, 1, 128], strides = [1, 1, 1]} : vector<2x8x128xf32> to vector<2x1x128xf32>
    %126 = vector.shape_cast %125 : vector<2x1x128xf32> to vector<2x128xf32>
    %cst_20 = arith.constant dense<0.000000e+00> : vector<2x128xf32>
    %127 = tpu.matmul %124, %10, %cst_20 {dimension_numbers = #tpu.dot_dimension_numbers<[1], [0], [0], [1], [0, 0, 1, 1], [], []>} : vector<2x32xf32>, vector<32x128xf32>, vector<2x128xf32> -> vector<2x128xf32>
    %128 = arith.addf %126, %127 : vector<2x128xf32>
    %129 = vector.broadcast %19 : vector<1x128xf32> to vector<2x128xf32>
    %130 = arith.mulf %128, %129 : vector<2x128xf32>
    %131 = math.tanh %130 : vector<2x128xf32>
    %132 = vector.broadcast %19 : vector<1x128xf32> to vector<2x128xf32>
    %133 = arith.mulf %131, %132 : vector<2x128xf32>
    %134 = vector.broadcast %22 : vector<1x128xf32> to vector<2x128xf32>
    %135 = arith.addf %133, %134 : vector<2x128xf32>
    %136 = vector.extract_strided_slice %135 {offsets = [0, 0], sizes = [2, 32], strides = [1, 1]} : vector<2x128xf32> to vector<2x32xf32>
    %137 = vector.extract_strided_slice %135 {offsets = [0, 32], sizes = [2, 32], strides = [1, 1]} : vector<2x128xf32> to vector<2x32xf32>
    %138 = vector.extract_strided_slice %135 {offsets = [0, 64], sizes = [2, 32], strides = [1, 1]} : vector<2x128xf32> to vector<2x32xf32>
    %139 = vector.extract_strided_slice %135 {offsets = [0, 96], sizes = [2, 32], strides = [1, 1]} : vector<2x128xf32> to vector<2x32xf32>
    %140 = arith.mulf %137, %122 : vector<2x32xf32>
    %141 = arith.mulf %136, %138 : vector<2x32xf32>
    %142 = arith.addf %140, %141 : vector<2x32xf32>
    %143 = math.tanh %142 : vector<2x32xf32>
    %144 = arith.mulf %139, %143 : vector<2x32xf32>
    %145 = vector.extract_strided_slice %8 {offsets = [0, 6, 0], sizes = [2, 1, 128], strides = [1, 1, 1]} : vector<2x8x128xf32> to vector<2x1x128xf32>
    %146 = vector.shape_cast %145 : vector<2x1x128xf32> to vector<2x128xf32>
    %cst_21 = arith.constant dense<0.000000e+00> : vector<2x128xf32>
    %147 = tpu.matmul %144, %10, %cst_21 {dimension_numbers = #tpu.dot_dimension_numbers<[1], [0], [0], [1], [0, 0, 1, 1], [], []>} : vector<2x32xf32>, vector<32x128xf32>, vector<2x128xf32> -> vector<2x128xf32>
    %148 = arith.addf %146, %147 : vector<2x128xf32>
    %149 = vector.broadcast %19 : vector<1x128xf32> to vector<2x128xf32>
    %150 = arith.mulf %148, %149 : vector<2x128xf32>
    %151 = math.tanh %150 : vector<2x128xf32>
    %152 = vector.broadcast %19 : vector<1x128xf32> to vector<2x128xf32>
    %153 = arith.mulf %151, %152 : vector<2x128xf32>
    %154 = vector.broadcast %22 : vector<1x128xf32> to vector<2x128xf32>
    %155 = arith.addf %153, %154 : vector<2x128xf32>
    %156 = vector.extract_strided_slice %155 {offsets = [0, 0], sizes = [2, 32], strides = [1, 1]} : vector<2x128xf32> to vector<2x32xf32>
    %157 = vector.extract_strided_slice %155 {offsets = [0, 32], sizes = [2, 32], strides = [1, 1]} : vector<2x128xf32> to vector<2x32xf32>
    %158 = vector.extract_strided_slice %155 {offsets = [0, 64], sizes = [2, 32], strides = [1, 1]} : vector<2x128xf32> to vector<2x32xf32>
    %159 = vector.extract_strided_slice %155 {offsets = [0, 96], sizes = [2, 32], strides = [1, 1]} : vector<2x128xf32> to vector<2x32xf32>
    %160 = arith.mulf %157, %142 : vector<2x32xf32>
    %161 = arith.mulf %156, %158 : vector<2x32xf32>
    %162 = arith.addf %160, %161 : vector<2x32xf32>
    %163 = math.tanh %162 : vector<2x32xf32>
    %164 = arith.mulf %159, %163 : vector<2x32xf32>
    %165 = vector.extract_strided_slice %8 {offsets = [0, 7, 0], sizes = [2, 1, 128], strides = [1, 1, 1]} : vector<2x8x128xf32> to vector<2x1x128xf32>
    %166 = vector.shape_cast %165 : vector<2x1x128xf32> to vector<2x128xf32>
    %cst_22 = arith.constant dense<0.000000e+00> : vector<2x128xf32>
    %167 = tpu.matmul %164, %10, %cst_22 {dimension_numbers = #tpu.dot_dimension_numbers<[1], [0], [0], [1], [0, 0, 1, 1], [], []>} : vector<2x32xf32>, vector<32x128xf32>, vector<2x128xf32> -> vector<2x128xf32>
    %168 = arith.addf %166, %167 : vector<2x128xf32>
    %169 = vector.broadcast %19 : vector<1x128xf32> to vector<2x128xf32>
    %170 = arith.mulf %168, %169 : vector<2x128xf32>
    %171 = math.tanh %170 : vector<2x128xf32>
    %172 = vector.broadcast %19 : vector<1x128xf32> to vector<2x128xf32>
    %173 = arith.mulf %171, %172 : vector<2x128xf32>
    %174 = vector.broadcast %22 : vector<1x128xf32> to vector<2x128xf32>
    %175 = arith.addf %173, %174 : vector<2x128xf32>
    %176 = vector.extract_strided_slice %175 {offsets = [0, 0], sizes = [2, 32], strides = [1, 1]} : vector<2x128xf32> to vector<2x32xf32>
    %177 = vector.extract_strided_slice %175 {offsets = [0, 32], sizes = [2, 32], strides = [1, 1]} : vector<2x128xf32> to vector<2x32xf32>
    %178 = vector.extract_strided_slice %175 {offsets = [0, 64], sizes = [2, 32], strides = [1, 1]} : vector<2x128xf32> to vector<2x32xf32>
    %179 = vector.extract_strided_slice %175 {offsets = [0, 96], sizes = [2, 32], strides = [1, 1]} : vector<2x128xf32> to vector<2x32xf32>
    %180 = arith.mulf %177, %162 : vector<2x32xf32>
    %181 = arith.mulf %176, %178 : vector<2x32xf32>
    %182 = arith.addf %180, %181 : vector<2x32xf32>
    %183 = math.tanh %182 : vector<2x32xf32>
    %184 = arith.mulf %179, %183 : vector<2x32xf32>
    %c0_23 = arith.constant 0 : index
    %c0_24 = arith.constant 0 : index
    %185 = vector.load %arg5[%c0_23, %c0_24] : memref<2x32xf32, #tpu.memory_space<vmem>>, vector<2x32xf32>
    %cst_25 = arith.constant dense<0.000000e+00> : vector<2x2xf32>
    %186 = tpu.matmul %184, %185, %cst_25 {dimension_numbers = #tpu.dot_dimension_numbers<[1], [1], [0], [0], [0, 0, 1, 0], [], []>} : vector<2x32xf32>, vector<2x32xf32>, vector<2x2xf32> -> vector<2x2xf32>
    %c0_26 = arith.constant 0 : index
    %c0_27 = arith.constant 0 : index
    %187 = vector.load %arg6[%c0_26, %c0_27] : memref<1x2xf32, #tpu.memory_space<vmem>>, vector<1x2xf32>
    %188 = vector.broadcast %187 : vector<1x2xf32> to vector<2x2xf32>
    %189 = arith.addf %186, %188 : vector<2x2xf32>
    %c0_28 = arith.constant 0 : index
    %c0_29 = arith.constant 0 : index
    %190 = vector.load %arg7[%c0_28, %c0_29] : memref<2x2xf32, #tpu.memory_space<vmem>>, vector<2x2xf32>
    tpu.vector_store %arg7[%c0_28, %c0_29], %189 {strides = array<i32>} : memref<2x2xf32, #tpu.memory_space<vmem>>, vector<2x2xf32>,
    return
  }
}

</mosaic_0001>

<bundles_post_ra>
// kernel: tpu_custom_call.1
= control target key start
LH: loop header
LB: loop body
LE: loop exit
PB: predicated region body
PF: predicated region fallthrough
CT: control target
= control target key end

     0   :  { %vm54_vm0 = vcmask 408576   ;;  %vm207_vm1 = vcmask 261120   ;;  %v2154_v3 = vmov 0.0   ;;  %vm2155_vm2 = vmmov 0   ;;  %s3002_s0 = inlined_call_operand.vmem [shape: f32[16,50], index: 0, kind: input, shape index: {}]   ;;  %s3003_s1 = inlined_call_operand.vmem [shape: f32[128,50], index: 1, kind: input, shape index: {}]   ;;  %s3004_s2 = inlined_call_operand.vmem [shape: f32[128,32], index: 2, kind: input, shape index: {}]   ;;  %s3005_s3 = inlined_call_operand.vmem [shape: f32[1,128], index: 3, kind: input, shape index: {}]   ;;  %s3006_s4 = inlined_call_operand.vmem [shape: f32[1,128], index: 4, kind: input, shape index: {}]   ;;  %s3007_s5 = inlined_call_operand.vmem [shape: f32[2,32], index: 5, kind: input, shape index: {}]   ;;  %s3008_s6 = inlined_call_operand.vmem [shape: f32[1,2], index: 6, kind: input, shape index: {}]   ;;  %s3009_s7 = inlined_call_operand.hbm [shape: f32[2,2], index: 7, kind: output, shape index: {}]  }
   0x1   :  { %v47_v0 = vld [vmem:[%s3003_s1 + $0x78] sm:$0xff]  ;;  %v46_v2 = vld [vmem:[%s3003_s1 + $0x70] sm:$0xff]  ;;  %1766 = vmatprep.subr.mxu1 %v2154_v3  ;;  %v45_v5 = vld [vmem:[%s3003_s1 + $0x68] sm:$0xff]  ;;  %1798 = vmatprep.mubr.msk.f32.mxu1 %vm2155_vm2, %v2154_v3 }
   0x2   :  { %v2206_v1 = vld [vmem:[%s3004_s2 + $0x78] sm:$0xff]  ;;  %1731 = vmatprep.subr.msk.mxu0 %vm54_vm0, %v47_v0  ;;  %v2221_v4 = vld [vmem:[%s3004_s2 + $0x70] sm:$0xff]  ;;  %v2236_v6 = vld [vmem:[%s3004_s2 + $0x68] sm:$0xff] }
   0x3   :  { %1732 = vmatpush3.xpose.msk.msra.mxu0 %vm54_vm0, %v47_v0  ;;  %1767 = vmatpush3.xpose.msk.msra.mxu1 %vm207_vm1, %v2206_v1  ;;  %v44_v7 = vld [vmem:[%s3003_s1 + $0x60] sm:$0xff]  ;;  %v43_v10 = vld [vmem:[%s3003_s1 + $0x58] sm:$0xff] }
   0x4   :  { %1733 = vmatprep.subr.msk.mxu0 %vm54_vm0, %v46_v2  ;;  %1768 = vmatprep.subr.mxu1 %v2154_v3  ;;  %v30_v8 = vld [vmem:[%s3002_s0] sm:$0xff] }
   0x5   :  { %v2252_v9 = vld [vmem:[%s3004_s2 + $0x60] sm:$0xff]  ;;  %1763 = vmatprep.mubr.msk.f32.mxu0 %vm54_vm0, %v30_v8 }
   0x7   :  { %1734 = vmatpush3.xpose.msk.msra.mxu0 %vm54_vm0, %v46_v2  ;;  %1769 = vmatpush3.xpose.msk.msra.mxu1 %vm207_vm1, %v2221_v4 }
   0x8   :  { %1735 = vmatprep.subr.msk.mxu0 %vm54_vm0, %v45_v5  ;;  %1770 = vmatprep.subr.mxu1 %v2154_v3 }
   0xb   :  { %1736 = vmatpush3.xpose.msk.msra.mxu0 %vm54_vm0, %v45_v5  ;;  %1771 = vmatpush3.xpose.msk.msra.mxu1 %vm207_vm1, %v2236_v6 }
   0xc   :  { %1737 = vmatprep.subr.msk.mxu0 %vm54_vm0, %v44_v7  ;;  %1772 = vmatprep.subr.mxu1 %v2154_v3 }
   0xd   :  { %12 = vsyncpa [#allocation3], 0  ;;  %v2266_v11 = vld [vmem:[%s3004_s2 + $0x58] sm:$0xff]  ;;  %v42_v12 = vld [vmem:[%s3003_s1 + $0x50] sm:$0xff]  ;;  %v49_v35 = vlaneseq  ;;  %v2156_v48 = vmov 0.5   ;;  %vm380_vm6 = vcmask 1041409  }
   0xe   :  { %v2279_v13 = vld [vmem:[%s3004_s2 + $0x50] sm:$0xff]  ;;  %v41_v14 = vld [vmem:[%s3003_s1 + $0x48] sm:$0xff]  ;;  %v40_v16 = vld [vmem:[%s3003_s1 + $0x40] sm:$0xff]  ;;  %s2159_s24 = smov [#allocation2]   ;;  %vm1403_vm7 = vcmask 9216  }
   0xf   :  { %1738 = vmatpush3.xpose.msk.msra.mxu0 %vm54_vm0, %v44_v7  ;;  %1773 = vmatpush3.xpose.msk.msra.mxu1 %vm207_vm1, %v2252_v9  ;;  %v2292_v15 = vld [vmem:[%s3004_s2 + $0x48] sm:$0xff]  ;;  %v2305_v17 = vld [vmem:[%s3004_s2 + $0x40] sm:$0xff]  ;;  %v39_v18 = vld [vmem:[%s3003_s1 + $0x38] sm:$0xff]  ;;  %v50_v36 = vshrl.u32 %v49_v35, 7  ;;  %v201_v39 = vand.u32 127, %v49_v35  ;;  %s1411_s25 = sshll.u32 %s2159_s24, 4  ;;  %s1412_s25 = int_to_ptr.vmem [resolvable:$true] %s1411_s25 }
  0x10   :  { %1739 = vmatprep.subr.msk.mxu0 %vm54_vm0, %v43_v10  ;;  %1774 = vmatprep.subr.mxu1 %v2154_v3  ;;  %v2318_v19 = vld [vmem:[%s3004_s2 + $0x38] sm:$0xff]  ;;  %v38_v20 = vld [vmem:[%s3003_s1 + $0x30] sm:$0xff]  ;;  %v37_v22 = vld [vmem:[%s3003_s1 + $0x28] sm:$0xff]  ;;  %p2137_p1 = scmp.lt.s32.totalorder %s1412_s25, %s1412_s25 }
  0x11   :  { %v2331_v21 = vld [vmem:[%s3004_s2 + $0x30] sm:$0xff]  ;;  %v2344_v23 = vld [vmem:[%s3004_s2 + $0x28] sm:$0xff]  ;;  %v36_v24 = vld [vmem:[%s3003_s1 + $0x20] sm:$0xff]  ;;  %v51_v41 = vsub.s32 0, %v50_v36  ;;  %vm202_vm3 = vcmp.ge.s32.totalorder %v201_v39, 64  ;;  %vm203_vm4 = vcmp.lt.s32.totalorder %v201_v39, 96 }
  0x12   :  { %v2357_v25 = vld [vmem:[%s3004_s2 + $0x20] sm:$0xff]  ;;  %v35_v26 = vld [vmem:[%s3003_s1 + $0x18] sm:$0xff]  ;;  %v34_v28 = vld [vmem:[%s3003_s1 + $0x10] sm:$0xff] }
  0x13   :  { %1740 = vmatpush3.xpose.msk.msra.mxu0 %vm54_vm0, %v43_v10  ;;  %1775 = vmatpush3.xpose.msk.msra.mxu1 %vm207_vm1, %v2266_v11  ;;  %v2370_v27 = vld [vmem:[%s3004_s2 + $0x18] sm:$0xff]  ;;  %v2383_v29 = vld [vmem:[%s3004_s2 + $0x10] sm:$0xff]  ;;  %v33_v30 = vld [vmem:[%s3003_s1 + $0x8] sm:$0xff] }
  0x14   :  { %1741 = vmatprep.subr.msk.mxu0 %vm54_vm0, %v42_v12  ;;  %1776 = vmatprep.subr.mxu1 %v2154_v3  ;;  %v2396_v31 = vld [vmem:[%s3004_s2 + $0x8] sm:$0xff]  ;;  %v32_v32 = vld [vmem:[%s3003_s1] sm:$0xff]  ;;  %vm2527_vm5 = vmand %vm202_vm3, %vm203_vm4 }
  0x15   :  { %v2409_v33 = vld [vmem:[%s3004_s2] sm:$0xff]  ;;  %v31_v34 = vld [vmem:[%s3002_s0 + $0x8] sm:$0xff]  ;;  %v2535_v49 = vsel %vm2527_vm5, 1.0, %v2156_v48  ;;  %v2545_v58 = vsel %vm2527_vm5, 0.0, %v2156_v48 }
  0x16   :  { %v27_v37 = vld [vmem:[%s3005_s3] sm:$0x1]  ;;  %s2157_s3 = smov 64  }
  0x17   :  { %1742 = vmatpush3.xpose.msk.msra.mxu0 %vm54_vm0, %v42_v12  ;;  %1777 = vmatpush3.xpose.msk.msra.mxu1 %vm207_vm1, %v2279_v13  ;;  %v28_v38 = vld [vmem:[%s3006_s4] sm:$0x1]  ;;  %s2158_s4 = smov 32  }
  0x18   :  { %1743 = vmatprep.subr.msk.mxu0 %vm54_vm0, %v41_v14  ;;  %1778 = vmatprep.subr.mxu1 %v2154_v3  ;;  %v29_v40 = vadd.f32 %v28_v38, %v27_v37 }
  0x1a   :  { %v52_v42 = vrot.slane %v29_v40, %v51_v41 }
  0x1b   :  { %1744 = vmatpush3.xpose.msk.msra.mxu0 %vm54_vm0, %v41_v14  ;;  %1779 = vmatpush3.xpose.msk.msra.mxu1 %vm207_vm1, %v2292_v15 }
  0x1c   :  { %1745 = vmatprep.subr.msk.mxu0 %vm54_vm0, %v40_v16  ;;  %1780 = vmatprep.subr.mxu1 %v2154_v3 }
  0x1f   :  { %1746 = vmatpush3.xpose.msk.msra.mxu0 %vm54_vm0, %v40_v16  ;;  %1781 = vmatpush3.xpose.msk.msra.mxu1 %vm207_vm1, %v2305_v17 }
  0x20   :  { %1747 = vmatprep.subr.msk.mxu0 %vm54_vm0, %v39_v18  ;;  %1782 = vmatprep.subr.mxu1 %v2154_v3 }
  0x23   :  { %1748 = vmatpush3.xpose.msk.msra.mxu0 %vm54_vm0, %v39_v18  ;;  %1783 = vmatpush3.xpose.msk.msra.mxu1 %vm207_vm1, %v2318_v19 }
  0x24   :  { %1749 = vmatprep.subr.msk.mxu0 %vm54_vm0, %v38_v20  ;;  %1784 = vmatprep.subr.mxu1 %v2154_v3 }
  0x27   :  { %1750 = vmatpush3.xpose.msk.msra.mxu0 %vm54_vm0, %v38_v20  ;;  %1785 = vmatpush3.xpose.msk.msra.mxu1 %vm207_vm1, %v2331_v21 }
  0x28   :  { %1751 = vmatprep.subr.msk.mxu0 %vm54_vm0, %v37_v22  ;;  %1786 = vmatprep.subr.mxu1 %v2154_v3 }
  0x2b   :  { %1752 = vmatpush3.xpose.msk.msra.mxu0 %vm54_vm0, %v37_v22  ;;  %1787 = vmatpush3.xpose.msk.msra.mxu1 %vm207_vm1, %v2344_v23 }
  0x2c   :  { %1753 = vmatprep.subr.msk.mxu0 %vm54_vm0, %v36_v24  ;;  %1788 = vmatprep.subr.mxu1 %v2154_v3 }
  0x2f   :  { %1754 = vmatpush3.xpose.msk.msra.mxu0 %vm54_vm0, %v36_v24  ;;  %1789 = vmatpush3.xpose.msk.msra.mxu1 %vm207_vm1, %v2357_v25 }
  0x30   :  { %1755 = vmatprep.subr.msk.mxu0 %vm54_vm0, %v35_v26  ;;  %1790 = vmatprep.subr.mxu1 %v2154_v3 }
  0x33   :  { %1756 = vmatpush3.xpose.msk.msra.mxu0 %vm54_vm0, %v35_v26  ;;  %1791 = vmatpush3.xpose.msk.msra.mxu1 %vm207_vm1, %v2370_v27 }
  0x34   :  { %1757 = vmatprep.subr.msk.mxu0 %vm54_vm0, %v34_v28  ;;  %1792 = vmatprep.subr.mxu1 %v2154_v3 }
  0x37   :  { %1758 = vmatpush3.xpose.msk.msra.mxu0 %vm54_vm0, %v34_v28  ;;  %1793 = vmatpush3.xpose.msk.msra.mxu1 %vm207_vm1, %v2383_v29 }
  0x38   :  { %1759 = vmatprep.subr.msk.mxu0 %vm54_vm0, %v33_v30  ;;  %1794 = vmatprep.subr.mxu1 %v2154_v3 }
  0x3b   :  { %1760 = vmatpush3.xpose.msk.msra.mxu0 %vm54_vm0, %v33_v30  ;;  %1795 = vmatpush3.xpose.msk.msra.mxu1 %vm207_vm1, %v2396_v31 }
  0x3c   :  { %1761 = vmatprep.subr.msk.mxu0 %vm54_vm0, %v32_v32  ;;  %1796 = vmatprep.subr.mxu1 %v2154_v3 }
  0x3f   :  { %1762 = vmatpush3.xpose.msk.msra.mxu0 %vm54_vm0, %v32_v32  ;;  %1797 = vmatpush3.xpose.msk.msra.mxu1 %vm207_vm1, %v2409_v33 }
  0x40   :  { %1801 = vmatprep.subr.mxu0 %v2154_v3  ;;  %1836 = vmatprep.subr.mxu1 %v2154_v3 }
  0x42   :  { %1764 = vmatmul.mubr.msk.f32.vlgmr.msra.gmra.mxu0 %vm54_vm0, %v31_v34  ;;  %1799 = vmatmul.mubr.f32.vlgmr.msra.gmra.mxu1 %v2154_v3 }
  0x43   :  { %1802 = vmatpush3.xpose.msk.msra.mxu0 %vm207_vm1, %v2206_v1  ;;  %1833 = vmatprep.mubr.msk.f32.mxu0 %vm2155_vm2, %v2154_v3 }
  0x44   :  { %1803 = vmatprep.subr.mxu0 %v2154_v3  ;;  %1837 = vmatpush3.xpose.msk.msra.mxu1 %vm207_vm1, %v2206_v1 }
  0x45   :  { %1838 = vmatprep.subr.mxu1 %v2154_v3  ;;  %1868 = vmatprep.mubr.msk.f32.mxu1 %vm2155_vm2, %v2154_v3 }
  0x47   :  { %1804 = vmatpush3.xpose.msk.msra.mxu0 %vm207_vm1, %v2221_v4 }
  0x48   :  { %1805 = vmatprep.subr.mxu0 %v2154_v3  ;;  %1839 = vmatpush3.xpose.msk.msra.mxu1 %vm207_vm1, %v2221_v4 }
  0x49   :  { %1840 = vmatprep.subr.mxu1 %v2154_v3 }
  0x4b   :  { %1806 = vmatpush3.xpose.msk.msra.mxu0 %vm207_vm1, %v2236_v6 }
  0x4c   :  { %1807 = vmatprep.subr.mxu0 %v2154_v3  ;;  %1841 = vmatpush3.xpose.msk.msra.mxu1 %vm207_vm1, %v2236_v6 }
  0x4d   :  { %1842 = vmatprep.subr.mxu1 %v2154_v3 }
  0x4f   :  { %1808 = vmatpush3.xpose.msk.msra.mxu0 %vm207_vm1, %v2252_v9 }
  0x50   :  { %1809 = vmatprep.subr.mxu0 %v2154_v3  ;;  %1843 = vmatpush3.xpose.msk.msra.mxu1 %vm207_vm1, %v2252_v9 }
  0x51   :  { %1844 = vmatprep.subr.mxu1 %v2154_v3 }
  0x53   :  { %1810 = vmatpush3.xpose.msk.msra.mxu0 %vm207_vm1, %v2266_v11 }
  0x54   :  { %1811 = vmatprep.subr.mxu0 %v2154_v3  ;;  %1845 = vmatpush3.xpose.msk.msra.mxu1 %vm207_vm1, %v2266_v11 }
  0x55   :  { %1846 = vmatprep.subr.mxu1 %v2154_v3 }
  0x57   :  { %1812 = vmatpush3.xpose.msk.msra.mxu0 %vm207_vm1, %v2279_v13 }
  0x58   :  { %1813 = vmatprep.subr.mxu0 %v2154_v3  ;;  %1847 = vmatpush3.xpose.msk.msra.mxu1 %vm207_vm1, %v2279_v13 }
  0x59   :  { %1848 = vmatprep.subr.mxu1 %v2154_v3 }
  0x5b   :  { %1814 = vmatpush3.xpose.msk.msra.mxu0 %vm207_vm1, %v2292_v15 }
  0x5c   :  { %1815 = vmatprep.subr.mxu0 %v2154_v3  ;;  %1849 = vmatpush3.xpose.msk.msra.mxu1 %vm207_vm1, %v2292_v15 }
  0x5d   :  { %1850 = vmatprep.subr.mxu1 %v2154_v3 }
  0x5f   :  { %1816 = vmatpush3.xpose.msk.msra.mxu0 %vm207_vm1, %v2305_v17 }
  0x60   :  { %1817 = vmatprep.subr.mxu0 %v2154_v3  ;;  %1851 = vmatpush3.xpose.msk.msra.mxu1 %vm207_vm1, %v2305_v17 }
  0x61   :  { %1852 = vmatprep.subr.mxu1 %v2154_v3 }
  0x63   :  { %1818 = vmatpush3.xpose.msk.msra.mxu0 %vm207_vm1, %v2318_v19 }
  0x64   :  { %1819 = vmatprep.subr.mxu0 %v2154_v3  ;;  %1853 = vmatpush3.xpose.msk.msra.mxu1 %vm207_vm1, %v2318_v19 }
  0x65   :  { %1854 = vmatprep.subr.mxu1 %v2154_v3 }
  0x67   :  { %1820 = vmatpush3.xpose.msk.msra.mxu0 %vm207_vm1, %v2331_v21 }
  0x68   :  { %1821 = vmatprep.subr.mxu0 %v2154_v3  ;;  %1855 = vmatpush3.xpose.msk.msra.mxu1 %vm207_vm1, %v2331_v21 }
  0x69   :  { %1856 = vmatprep.subr.mxu1 %v2154_v3 }
  0x6b   :  { %1822 = vmatpush3.xpose.msk.msra.mxu0 %vm207_vm1, %v2344_v23 }
  0x6c   :  { %1823 = vmatprep.subr.mxu0 %v2154_v3  ;;  %1857 = vmatpush3.xpose.msk.msra.mxu1 %vm207_vm1, %v2344_v23 }
  0x6d   :  { %1858 = vmatprep.subr.mxu1 %v2154_v3 }
  0x6f   :  { %1824 = vmatpush3.xpose.msk.msra.mxu0 %vm207_vm1, %v2357_v25 }
  0x70   :  { %1825 = vmatprep.subr.mxu0 %v2154_v3  ;;  %1859 = vmatpush3.xpose.msk.msra.mxu1 %vm207_vm1, %v2357_v25 }
  0x71   :  { %1860 = vmatprep.subr.mxu1 %v2154_v3 }
  0x73   :  { %1826 = vmatpush3.xpose.msk.msra.mxu0 %vm207_vm1, %v2370_v27 }
  0x74   :  { %1827 = vmatprep.subr.mxu0 %v2154_v3  ;;  %1861 = vmatpush3.xpose.msk.msra.mxu1 %vm207_vm1, %v2370_v27 }
  0x75   :  { %1862 = vmatprep.subr.mxu1 %v2154_v3 }
  0x77   :  { %1828 = vmatpush3.xpose.msk.msra.mxu0 %vm207_vm1, %v2383_v29 }
  0x78   :  { %1829 = vmatprep.subr.mxu0 %v2154_v3  ;;  %1863 = vmatpush3.xpose.msk.msra.mxu1 %vm207_vm1, %v2383_v29 }
  0x79   :  { %1864 = vmatprep.subr.mxu1 %v2154_v3 }
  0x7b   :  { %1830 = vmatpush3.xpose.msk.msra.mxu0 %vm207_vm1, %v2396_v31 }
  0x7c   :  { %1831 = vmatprep.subr.mxu0 %v2154_v3  ;;  %1865 = vmatpush3.xpose.msk.msra.mxu1 %vm207_vm1, %v2396_v31 }
  0x7d   :  { %1866 = vmatprep.subr.mxu1 %v2154_v3 }
  0x7f   :  { %1832 = vmatpush3.xpose.msk.msra.mxu0 %vm207_vm1, %v2409_v33 }
  0x80   :  { %1867 = vmatpush3.xpose.msk.msra.mxu1 %vm207_vm1, %v2409_v33  ;;  %1871 = vmatprep.subr.mxu0 %v2154_v3 }
  0x81   :  { %1906 = vmatprep.subr.mxu1 %v2154_v3 }
 0x102   :  { %v1765_v44 = vpop.f32.mrf.mxu0  ;;  %v325_v45 = vpop.f32.mrf.mxu1 }
 0x103   :  { %v2531_v46 = vadd.f32 %v1765_v44, %v52_v42  ;;  %v330_v47 = vrot.slane %v325_v45, 1 }
 0x104   :  { %v175_v50 = vpop.f32.mrf.mxu0  ;;  %v1800_v51 = vpop.f32.mrf.mxu1 }
 0x105   :  { %v334_v52 = vadd.f32 %v330_v47, %v2531_v46  ;;  %v2538_v53 = vadd.f32 %v175_v50, %v52_v42 }
 0x107   :  { %v336_v54 = vmul.f32 %v334_v52, %v2535_v49  ;;  %v333_v55 = vadd.f32 %v325_v45, %v2538_v53 }
 0x109   :  { %2057 = vtanh.f32 %v336_v54  ;;  %v335_v56 = vmul.f32 %v333_v55, %v2535_v49 }
 0x10b   :  { %2059 = vtanh.f32 %v335_v56 }
 0x116   :  { %v2058_v57 = vpop.eup %2057 }
 0x117   :  { %v340_v59 = vmul.f32 %v2058_v57, %v2535_v49 }
 0x118   :  { %v2060_v60 = vpop.eup %2059 }
 0x119   :  { %v342_v61 = vadd.f32 %v340_v59, %v2545_v58  ;;  %v339_v62 = vmul.f32 %v2060_v60, %v2535_v49 }
 0x11b   :  { %349 = vrot.lane.b32.xlu0 %v342_v61, %s2157_s3  ;;  %v341_v63 = vadd.f32 %v339_v62, %v2545_v58  ;;  %v344_v8 = vmul.f32 0.0, %v342_v61 }
 0x11d   :  { %v343_v14 = vmul.f32 0.0, %v341_v63 }
 0x11f   :  { %347 = vrot.lane.b32.xlu0 %v341_v63, %s2157_s3 }
 0x18d   :  { %v350_v0 = vpop.permute.xlu0 %349 }
 0x18e   :  { %v354_v2 = vmul.f32 %v350_v0, %v342_v61 }
 0x190   :  { %359 = vrot.lane.b32.xlu1 %v354_v2, %s2158_s4 }
 0x191   :  { %v348_v5 = vpop.permute.xlu0 %347 }
 0x192   :  { %v353_v7 = vmul.f32 %v348_v5, %v341_v63 }
 0x194   :  { %357 = vrot.lane.b32.xlu1 %v353_v7, %s2158_s4 }
 0x202   :  { %v360_v10 = vpop.permute.xlu1 %359 }
 0x203   :  { %v2555_v12 = vadd.f32 %v360_v10, %v344_v8 }
 0x205   :  { %2061 = vtanh.f32 %v2555_v12  ;;  %v473_v56 = vrot.slane %v2555_v12, 7 }
 0x206   :  { %v358_v16 = vpop.permute.xlu1 %357 }
 0x207   :  { %v2558_v18 = vadd.f32 %v358_v16, %v343_v14 }
 0x209   :  { %2063 = vtanh.f32 %v2558_v18  ;;  %v472_v57 = vrot.slane %v2558_v18, 7 }
 0x212   :  { %v2062_v20 = vpop.eup %2061 }
 0x213   :  { %371 = vrot.lane.b32.xlu0 %v2062_v20, %s2157_s3 }
 0x216   :  { %v2064_v22 = vpop.eup %2063 }
 0x217   :  { %369 = vrot.lane.b32.xlu1 %v2064_v22, %s2157_s3 }
 0x285   :  { %v372_v24 = vpop.permute.xlu0 %371 }
 0x286   :  { %v376_v26 = vmul.f32 %v372_v24, %v342_v61 }
 0x288   :  { %v379_v30 = vrot.slane %v376_v26, 7 }
 0x289   :  { %v370_v28 = vpop.permute.xlu1 %369 }
 0x28a   :  { %v375_v32 = vmul.f32 %v370_v28, %v341_v63 }
 0x28c   :  { %v381_v34 = vsel %vm380_vm6, %v379_v30, %v375_v32 }
 0x28d   :  { %382 = vrot.lane.b32.xlu0 %v381_v34, %s2158_s4 }
 0x2ff   :  { %v383_v35 = vpop.permute.xlu0 %382 }
 0x300   :  { %1834 = vmatmul.mubr.msk.f32.vlgmr.msra.gmra.mxu0 %vm207_vm1, %v383_v35 }
 0x301   :  { %1872 = vmatpush3.xpose.msk.msra.mxu0 %vm207_vm1, %v2206_v1  ;;  %1903 = vmatprep.mubr.msk.f32.mxu0 %vm2155_vm2, %v2154_v3 }
 0x302   :  { %1873 = vmatprep.subr.mxu0 %v2154_v3 }
 0x305   :  { %1874 = vmatpush3.xpose.msk.msra.mxu0 %vm207_vm1, %v2221_v4 }
 0x306   :  { %1875 = vmatprep.subr.mxu0 %v2154_v3 }
 0x309   :  { %1876 = vmatpush3.xpose.msk.msra.mxu0 %vm207_vm1, %v2236_v6 }
 0x30a   :  { %1877 = vmatprep.subr.mxu0 %v2154_v3 }
 0x30d   :  { %1878 = vmatpush3.xpose.msk.msra.mxu0 %vm207_vm1, %v2252_v9 }
 0x30e   :  { %1879 = vmatprep.subr.mxu0 %v2154_v3 }
 0x311   :  { %1880 = vmatpush3.xpose.msk.msra.mxu0 %vm207_vm1, %v2266_v11 }
 0x312   :  { %1881 = vmatprep.subr.mxu0 %v2154_v3 }
 0x315   :  { %1882 = vmatpush3.xpose.msk.msra.mxu0 %vm207_vm1, %v2279_v13 }
 0x316   :  { %1883 = vmatprep.subr.mxu0 %v2154_v3 }
 0x319   :  { %1884 = vmatpush3.xpose.msk.msra.mxu0 %vm207_vm1, %v2292_v15 }
 0x31a   :  { %1885 = vmatprep.subr.mxu0 %v2154_v3 }
 0x31d   :  { %1886 = vmatpush3.xpose.msk.msra.mxu0 %vm207_vm1, %v2305_v17 }
 0x31e   :  { %1887 = vmatprep.subr.mxu0 %v2154_v3 }
 0x321   :  { %1888 = vmatpush3.xpose.msk.msra.mxu0 %vm207_vm1, %v2318_v19 }
 0x322   :  { %1889 = vmatprep.subr.mxu0 %v2154_v3 }
 0x325   :  { %1890 = vmatpush3.xpose.msk.msra.mxu0 %vm207_vm1, %v2331_v21 }
 0x326   :  { %1891 = vmatprep.subr.mxu0 %v2154_v3 }
 0x329   :  { %1892 = vmatpush3.xpose.msk.msra.mxu0 %vm207_vm1, %v2344_v23 }
 0x32a   :  { %1893 = vmatprep.subr.mxu0 %v2154_v3 }
 0x32d   :  { %1894 = vmatpush3.xpose.msk.msra.mxu0 %vm207_vm1, %v2357_v25 }
 0x32e   :  { %1895 = vmatprep.subr.mxu0 %v2154_v3 }
 0x331   :  { %1896 = vmatpush3.xpose.msk.msra.mxu0 %vm207_vm1, %v2370_v27 }
 0x332   :  { %1897 = vmatprep.subr.mxu0 %v2154_v3 }
 0x335   :  { %1898 = vmatpush3.xpose.msk.msra.mxu0 %vm207_vm1, %v2383_v29 }
 0x336   :  { %1899 = vmatprep.subr.mxu0 %v2154_v3 }
 0x339   :  { %1900 = vmatpush3.xpose.msk.msra.mxu0 %vm207_vm1, %v2396_v31 }
 0x33a   :  { %1901 = vmatprep.subr.mxu0 %v2154_v3 }
 0x33d   :  { %1902 = vmatpush3.xpose.msk.msra.mxu0 %vm207_vm1, %v2409_v33 }
 0x33e   :  { %1941 = vmatprep.subr.mxu0 %v2154_v3 }
 0x3c0   :  { %v452_v36 = vpop.f32.mrf.mxu0 }
 0x3c1   :  { %v457_v37 = vrot.slane %v452_v36, 7  ;;  %v461_v38 = vadd.f32 %v452_v36, %v2531_v46 }
 0x3c2   :  { %v1835_v39 = vpop.f32.mrf.mxu0 }
 0x3c3   :  { %v460_v40 = vadd.f32 %v457_v37, %v2538_v53  ;;  %v463_v41 = vmul.f32 %v461_v38, %v2535_v49 }
 0x3c5   :  { %v462_v42 = vmul.f32 %v460_v40, %v2535_v49  ;;  %2065 = vtanh.f32 %v463_v41 }
 0x3c7   :  { %2067 = vtanh.f32 %v462_v42 }
 0x3d2   :  { %v2066_v43 = vpop.eup %2065 }
 0x3d3   :  { %v467_v44 = vmul.f32 %v2066_v43, %v2535_v49 }
 0x3d4   :  { %v2068_v45 = vpop.eup %2067 }
 0x3d5   :  { %v469_v47 = vadd.f32 %v467_v44, %v2545_v58  ;;  %v466_v48 = vmul.f32 %v2068_v45, %v2535_v49 }
 0x3d7   :  { %482 = vrot.lane.b32.xlu0 %v469_v47, %s2157_s3  ;;  %v468_v50 = vadd.f32 %v466_v48, %v2545_v58  ;;  %v477_v59 = vmul.f32 %v473_v56, %v469_v47 }
 0x3d9   :  { %480 = vrot.lane.b32.xlu1 %v468_v50, %s2157_s3  ;;  %v476_v62 = vmul.f32 %v472_v57, %v468_v50 }
 0x449   :  { %v483_v51 = vpop.permute.xlu0 %482 }
 0x44a   :  { %v487_v52 = vmul.f32 %v483_v51, %v469_v47 }
 0x44b   :  { %v481_v54 = vpop.permute.xlu1 %480 }
 0x44c   :  { %v486_v55 = vmul.f32 %v481_v54, %v468_v50  ;;  %492 = vrot.lane.b32.xlu0 %v487_v52, %s2158_s4 }
 0x44e   :  { %490 = vrot.lane.b32.xlu1 %v486_v55, %s2158_s4 }
 0x4be   :  { %v493_v60 = vpop.permute.xlu0 %492 }
 0x4bf   :  { %v2630_v61 = vadd.f32 %v493_v60, %v477_v59 }
 0x4c0   :  { %v491_v63 = vpop.permute.xlu1 %490 }
 0x4c1   :  { %2069 = vtanh.f32 %v2630_v61  ;;  %v2633_v0 = vadd.f32 %v491_v63, %v476_v62 }
 0x4c3   :  { %2071 = vtanh.f32 %v2633_v0  ;;  %v605_v45 = vrot.slane %v2633_v0, 7 }
 0x4ce   :  { %v2070_v2 = vpop.eup %2069 }
 0x4cf   :  { %504 = vrot.lane.b32.xlu0 %v2070_v2, %s2157_s3 }
 0x4d0   :  { %v2072_v5 = vpop.eup %2071 }
 0x4d1   :  { %502 = vrot.lane.b32.xlu1 %v2072_v5, %s2157_s3 }
 0x541   :  { %v505_v7 = vpop.permute.xlu0 %504 }
 0x542   :  { %v509_v12 = vmul.f32 %v505_v7, %v469_v47  ;;  %v606_v47 = vrot.slane %v2630_v61, 7 }
 0x543   :  { %v503_v8 = vpop.permute.xlu1 %502 }
 0x544   :  { %v508_v10 = vmul.f32 %v503_v8, %v468_v50 }
 0x546   :  { %v512_v14 = vrot.slane %v508_v10, 1 }
 0x548   :  { %v513_v16 = vsel %vm380_vm6, %v509_v12, %v512_v14 }
 0x549   :  { %514 = vrot.lane.b32.xlu1 %v513_v16, %s2158_s4 }
 0x5bb   :  { %v515_v18 = vpop.permute.xlu1 %514 }
 0x5bc   :  { %1869 = vmatmul.mubr.msk.f32.vlgmr.msra.gmra.mxu1 %vm207_vm1, %v515_v18 }
 0x5bd   :  { %1907 = vmatpush3.xpose.msk.msra.mxu1 %vm207_vm1, %v2206_v1  ;;  %1938 = vmatprep.mubr.msk.f32.mxu1 %vm2155_vm2, %v2154_v3 }
 0x5be   :  { %1908 = vmatprep.subr.mxu1 %v2154_v3 }
 0x5c1   :  { %1909 = vmatpush3.xpose.msk.msra.mxu1 %vm207_vm1, %v2221_v4 }
 0x5c2   :  { %1910 = vmatprep.subr.mxu1 %v2154_v3 }
 0x5c5   :  { %1911 = vmatpush3.xpose.msk.msra.mxu1 %vm207_vm1, %v2236_v6 }
 0x5c6   :  { %1912 = vmatprep.subr.mxu1 %v2154_v3 }
 0x5c9   :  { %1913 = vmatpush3.xpose.msk.msra.mxu1 %vm207_vm1, %v2252_v9 }
 0x5ca   :  { %1914 = vmatprep.subr.mxu1 %v2154_v3 }
 0x5cd   :  { %1915 = vmatpush3.xpose.msk.msra.mxu1 %vm207_vm1, %v2266_v11 }
 0x5ce   :  { %1916 = vmatprep.subr.mxu1 %v2154_v3 }
 0x5d1   :  { %1917 = vmatpush3.xpose.msk.msra.mxu1 %vm207_vm1, %v2279_v13 }
 0x5d2   :  { %1918 = vmatprep.subr.mxu1 %v2154_v3 }
 0x5d5   :  { %1919 = vmatpush3.xpose.msk.msra.mxu1 %vm207_vm1, %v2292_v15 }
 0x5d6   :  { %1920 = vmatprep.subr.mxu1 %v2154_v3 }
 0x5d9   :  { %1921 = vmatpush3.xpose.msk.msra.mxu1 %vm207_vm1, %v2305_v17 }
 0x5da   :  { %1922 = vmatprep.subr.mxu1 %v2154_v3 }
 0x5dd   :  { %1923 = vmatpush3.xpose.msk.msra.mxu1 %vm207_vm1, %v2318_v19 }
 0x5de   :  { %1924 = vmatprep.subr.mxu1 %v2154_v3 }
 0x5e1   :  { %1925 = vmatpush3.xpose.msk.msra.mxu1 %vm207_vm1, %v2331_v21 }
 0x5e2   :  { %1926 = vmatprep.subr.mxu1 %v2154_v3 }
 0x5e5   :  { %1927 = vmatpush3.xpose.msk.msra.mxu1 %vm207_vm1, %v2344_v23 }
 0x5e6   :  { %1928 = vmatprep.subr.mxu1 %v2154_v3 }
 0x5e9   :  { %1929 = vmatpush3.xpose.msk.msra.mxu1 %vm207_vm1, %v2357_v25 }
 0x5ea   :  { %1930 = vmatprep.subr.mxu1 %v2154_v3 }
 0x5ed   :  { %1931 = vmatpush3.xpose.msk.msra.mxu1 %vm207_vm1, %v2370_v27 }
 0x5ee   :  { %1932 = vmatprep.subr.mxu1 %v2154_v3 }
 0x5f1   :  { %1933 = vmatpush3.xpose.msk.msra.mxu1 %vm207_vm1, %v2383_v29 }
 0x5f2   :  { %1934 = vmatprep.subr.mxu1 %v2154_v3 }
 0x5f5   :  { %1935 = vmatpush3.xpose.msk.msra.mxu1 %vm207_vm1, %v2396_v31 }
 0x5f6   :  { %1936 = vmatprep.subr.mxu1 %v2154_v3 }
 0x5f9   :  { %1937 = vmatpush3.xpose.msk.msra.mxu1 %vm207_vm1, %v2409_v33 }
 0x5fa   :  { %1976 = vmatprep.subr.mxu1 %v2154_v3 }
 0x67c   :  { %v584_v20 = vpop.f32.mrf.mxu1 }
 0x67d   :  { %v589_v22 = vrot.slane %v584_v20, 6  ;;  %v590_v24 = vrot.slane %v584_v20, 7 }
 0x67e   :  { %v1870_v26 = vpop.f32.mrf.mxu1 }
 0x67f   :  { %v593_v28 = vadd.f32 %v589_v22, %v2538_v53  ;;  %v594_v30 = vadd.f32 %v590_v24, %v2531_v46 }
 0x681   :  { %v595_v32 = vmul.f32 %v593_v28, %v2535_v49  ;;  %v596_v34 = vmul.f32 %v594_v30, %v2535_v49 }
 0x683   :  { %2073 = vtanh.f32 %v595_v32 }
 0x684   :  { %2075 = vtanh.f32 %v596_v34 }
 0x690   :  { %v2074_v35 = vpop.eup %2073 }
 0x691   :  { %v2076_v36 = vpop.eup %2075  ;;  %v599_v37 = vmul.f32 %v2074_v35, %v2535_v49 }
 0x692   :  { %v600_v38 = vmul.f32 %v2076_v36, %v2535_v49 }
 0x693   :  { %v601_v39 = vadd.f32 %v599_v37, %v2545_v58 }
 0x694   :  { %v602_v40 = vadd.f32 %v600_v38, %v2545_v58 }
 0x695   :  { %613 = vrot.lane.b32.xlu0 %v601_v39, %s2157_s3  ;;  %v609_v48 = vmul.f32 %v605_v45, %v601_v39 }
 0x696   :  { %615 = vrot.lane.b32.xlu1 %v602_v40, %s2157_s3  ;;  %v610_v50 = vmul.f32 %v606_v47, %v602_v40 }
 0x707   :  { %v614_v41 = vpop.permute.xlu0 %613 }
 0x708   :  { %v616_v42 = vpop.permute.xlu1 %615  ;;  %v619_v43 = vmul.f32 %v614_v41, %v601_v39 }
 0x709   :  { %v620_v44 = vmul.f32 %v616_v42, %v602_v40 }
 0x70a   :  { %623 = vrot.lane.b32.xlu0 %v619_v43, %s2158_s4 }
 0x70b   :  { %625 = vrot.lane.b32.xlu1 %v620_v44, %s2158_s4 }
 0x77c   :  { %v624_v51 = vpop.permute.xlu0 %623 }
 0x77d   :  { %v626_v52 = vpop.permute.xlu1 %625  ;;  %v2705_v54 = vadd.f32 %v624_v51, %v609_v48 }
 0x77e   :  { %v2707_v55 = vadd.f32 %v626_v52, %v610_v50 }
 0x77f   :  { %2077 = vtanh.f32 %v2705_v54  ;;  %v739_v38 = vrot.slane %v2705_v54, 7 }
 0x780   :  { %2079 = vtanh.f32 %v2707_v55 }
 0x78c   :  { %v2078_v56 = vpop.eup %2077 }
 0x78d   :  { %v2080_v57 = vpop.eup %2079  ;;  %635 = vrot.lane.b32.xlu0 %v2078_v56, %s2157_s3 }
 0x78e   :  { %637 = vrot.lane.b32.xlu1 %v2080_v57, %s2157_s3 }
 0x7ff   :  { %v636_v59 = vpop.permute.xlu0 %635 }
 0x800   :  { %v638_v60 = vpop.permute.xlu1 %637  ;;  %v641_v61 = vmul.f32 %v636_v59, %v601_v39  ;;  %v740_v39 = vrot.slane %v2707_v55, 7 }
 0x801   :  { %v642_v62 = vmul.f32 %v638_v60, %v602_v40 }
 0x802   :  { %v645_v63 = vrot.slane %v641_v61, 2 }
 0x803   :  { %v646_v0 = vrot.slane %v642_v62, 1 }
 0x805   :  { %v647_v2 = vsel %vm380_vm6, %v646_v0, %v645_v63 }
 0x806   :  { %648 = vrot.lane.b32.xlu0 %v647_v2, %s2158_s4 }
 0x878   :  { %v649_v5 = vpop.permute.xlu0 %648 }
 0x879   :  { %1904 = vmatmul.mubr.msk.f32.vlgmr.msra.gmra.mxu0 %vm207_vm1, %v649_v5 }
 0x87a   :  { %1942 = vmatpush3.xpose.msk.msra.mxu0 %vm207_vm1, %v2206_v1  ;;  %1973 = vmatprep.mubr.msk.f32.mxu0 %vm2155_vm2, %v2154_v3 }
 0x87b   :  { %1943 = vmatprep.subr.mxu0 %v2154_v3 }
 0x87e   :  { %1944 = vmatpush3.xpose.msk.msra.mxu0 %vm207_vm1, %v2221_v4 }
 0x87f   :  { %1945 = vmatprep.subr.mxu0 %v2154_v3 }
 0x882   :  { %1946 = vmatpush3.xpose.msk.msra.mxu0 %vm207_vm1, %v2236_v6 }
 0x883   :  { %1947 = vmatprep.subr.mxu0 %v2154_v3 }
 0x886   :  { %1948 = vmatpush3.xpose.msk.msra.mxu0 %vm207_vm1, %v2252_v9 }
 0x887   :  { %1949 = vmatprep.subr.mxu0 %v2154_v3 }
 0x88a   :  { %1950 = vmatpush3.xpose.msk.msra.mxu0 %vm207_vm1, %v2266_v11 }
 0x88b   :  { %1951 = vmatprep.subr.mxu0 %v2154_v3 }
 0x88e   :  { %1952 = vmatpush3.xpose.msk.msra.mxu0 %vm207_vm1, %v2279_v13 }
 0x88f   :  { %1953 = vmatprep.subr.mxu0 %v2154_v3 }
 0x892   :  { %1954 = vmatpush3.xpose.msk.msra.mxu0 %vm207_vm1, %v2292_v15 }
 0x893   :  { %1955 = vmatprep.subr.mxu0 %v2154_v3 }
 0x896   :  { %1956 = vmatpush3.xpose.msk.msra.mxu0 %vm207_vm1, %v2305_v17 }
 0x897   :  { %1957 = vmatprep.subr.mxu0 %v2154_v3 }
 0x89a   :  { %1958 = vmatpush3.xpose.msk.msra.mxu0 %vm207_vm1, %v2318_v19 }
 0x89b   :  { %1959 = vmatprep.subr.mxu0 %v2154_v3 }
 0x89e   :  { %1960 = vmatpush3.xpose.msk.msra.mxu0 %vm207_vm1, %v2331_v21 }
 0x89f   :  { %1961 = vmatprep.subr.mxu0 %v2154_v3 }
 0x8a2   :  { %1962 = vmatpush3.xpose.msk.msra.mxu0 %vm207_vm1, %v2344_v23 }
 0x8a3   :  { %1963 = vmatprep.subr.mxu0 %v2154_v3 }
 0x8a6   :  { %1964 = vmatpush3.xpose.msk.msra.mxu0 %vm207_vm1, %v2357_v25 }
 0x8a7   :  { %1965 = vmatprep.subr.mxu0 %v2154_v3 }
 0x8aa   :  { %1966 = vmatpush3.xpose.msk.msra.mxu0 %vm207_vm1, %v2370_v27 }
 0x8ab   :  { %1967 = vmatprep.subr.mxu0 %v2154_v3 }
 0x8ae   :  { %1968 = vmatpush3.xpose.msk.msra.mxu0 %vm207_vm1, %v2383_v29 }
 0x8af   :  { %1969 = vmatprep.subr.mxu0 %v2154_v3 }
 0x8b2   :  { %1970 = vmatpush3.xpose.msk.msra.mxu0 %vm207_vm1, %v2396_v31 }
 0x8b3   :  { %1971 = vmatprep.subr.mxu0 %v2154_v3 }
 0x8b6   :  { %1972 = vmatpush3.xpose.msk.msra.mxu0 %vm207_vm1, %v2409_v33 }
 0x8b7   :  { %2011 = vmatprep.subr.mxu0 %v2154_v3 }
 0x939   :  { %v718_v7 = vpop.f32.mrf.mxu0 }
 0x93a   :  { %v723_v8 = vrot.slane %v718_v7, 5  ;;  %v724_v10 = vrot.slane %v718_v7, 6 }
 0x93b   :  { %v1905_v12 = vpop.f32.mrf.mxu0 }
 0x93c   :  { %v727_v14 = vadd.f32 %v723_v8, %v2538_v53  ;;  %v728_v16 = vadd.f32 %v724_v10, %v2531_v46 }
 0x93e   :  { %v729_v18 = vmul.f32 %v727_v14, %v2535_v49  ;;  %v730_v20 = vmul.f32 %v728_v16, %v2535_v49 }
 0x940   :  { %2081 = vtanh.f32 %v729_v18 }
 0x941   :  { %2083 = vtanh.f32 %v730_v20 }
 0x94d   :  { %v2082_v22 = vpop.eup %2081 }
 0x94e   :  { %v2084_v24 = vpop.eup %2083  ;;  %v733_v26 = vmul.f32 %v2082_v22, %v2535_v49 }
 0x94f   :  { %v734_v28 = vmul.f32 %v2084_v24, %v2535_v49 }
 0x950   :  { %v735_v30 = vadd.f32 %v733_v26, %v2545_v58 }
 0x951   :  { %v736_v32 = vadd.f32 %v734_v28, %v2545_v58 }
 0x952   :  { %747 = vrot.lane.b32.xlu1 %v735_v30, %s2157_s3  ;;  %v743_v40 = vmul.f32 %v739_v38, %v735_v30  ;;  %v2121_v38 = vld [vmem:[%s3004_s2 + $0x78] sm:$0xff] }
 0x953   :  { %749 = vrot.lane.b32.xlu0 %v736_v32, %s2157_s3  ;;  %v744_v41 = vmul.f32 %v740_v39, %v736_v32  ;;  %v2122_v39 = vld [vmem:[%s3004_s2 + $0x70] sm:$0xff] }
 0x9c4   :  { %v748_v34 = vpop.permute.xlu1 %747 }
 0x9c5   :  { %v750_v35 = vpop.permute.xlu0 %749  ;;  %v753_v36 = vmul.f32 %v748_v34, %v735_v30 }
 0x9c6   :  { %v754_v37 = vmul.f32 %v750_v35, %v736_v32 }
 0x9c7   :  { %757 = vrot.lane.b32.xlu1 %v753_v36, %s2158_s4 }
 0x9c8   :  { %759 = vrot.lane.b32.xlu0 %v754_v37, %s2158_s4 }
 0xa39   :  { %v758_v42 = vpop.permute.xlu1 %757 }
 0xa3a   :  { %v760_v43 = vpop.permute.xlu0 %759  ;;  %v2780_v44 = vadd.f32 %v758_v42, %v743_v40  ;;  %v2123_v40 = vld [vmem:[%s3004_s2 + $0x68] sm:$0xff]  ;;  %v2125_v42 = vld [vmem:[%s3004_s2 + $0x58] sm:$0xff] }
 0xa3b   :  { %v2782_v45 = vadd.f32 %v760_v43, %v744_v41  ;;  %v2124_v41 = vld [vmem:[%s3004_s2 + $0x60] sm:$0xff]  ;;  %v2126_v43 = vld [vmem:[%s3004_s2 + $0x50] sm:$0xff] }
 0xa3c   :  { %2085 = vtanh.f32 %v2780_v44  ;;  %v873_v7 = vrot.slane %v2780_v44, 7  ;;  %v2127_v44 = vld [vmem:[%s3004_s2 + $0x48] sm:$0xff] }
 0xa3d   :  { %2087 = vtanh.f32 %v2782_v45  ;;  %v874_v8 = vrot.slane %v2782_v45, 7  ;;  %v2128_v45 = vld [vmem:[%s3004_s2 + $0x40] sm:$0xff] }
 0xa49   :  { %v2086_v47 = vpop.eup %2085 }
 0xa4a   :  { %v2088_v48 = vpop.eup %2087  ;;  %769 = vrot.lane.b32.xlu1 %v2086_v47, %s2157_s3  ;;  %v2129_v47 = vld [vmem:[%s3004_s2 + $0x38] sm:$0xff] }
 0xa4b   :  { %771 = vrot.lane.b32.xlu0 %v2088_v48, %s2157_s3  ;;  %v2130_v48 = vld [vmem:[%s3004_s2 + $0x30] sm:$0xff] }
 0xabc   :  { %v770_v50 = vpop.permute.xlu1 %769 }
 0xabd   :  { %v772_v51 = vpop.permute.xlu0 %771  ;;  %v775_v52 = vmul.f32 %v770_v50, %v735_v30  ;;  %v2131_v50 = vld [vmem:[%s3004_s2 + $0x28] sm:$0xff] }
 0xabe   :  { %v776_v54 = vmul.f32 %v772_v51, %v736_v32 }
 0xabf   :  { %v779_v55 = vrot.slane %v775_v52, 3 }
 0xac0   :  { %v780_v56 = vrot.slane %v776_v54, 2 }
 0xac2   :  { %v781_v57 = vsel %vm380_vm6, %v780_v56, %v779_v55 }
 0xac3   :  { %782 = vrot.lane.b32.xlu1 %v781_v57, %s2158_s4 }
 0xb35   :  { %v783_v59 = vpop.permute.xlu1 %782 }
 0xb36   :  { %1939 = vmatmul.mubr.msk.f32.vlgmr.msra.gmra.mxu1 %vm207_vm1, %v783_v59 }
 0xb37   :  { %1977 = vmatpush3.xpose.msk.msra.mxu1 %vm207_vm1, %v2206_v1  ;;  %2008 = vmatprep.mubr.msk.f32.mxu1 %vm2155_vm2, %v2154_v3 }
 0xb38   :  { %1978 = vmatprep.subr.mxu1 %v2154_v3 }
 0xb3b   :  { %1979 = vmatpush3.xpose.msk.msra.mxu1 %vm207_vm1, %v2221_v4 }
 0xb3c   :  { %1980 = vmatprep.subr.mxu1 %v2154_v3 }
 0xb3f   :  { %1981 = vmatpush3.xpose.msk.msra.mxu1 %vm207_vm1, %v2236_v6 }
 0xb40   :  { %1982 = vmatprep.subr.mxu1 %v2154_v3 }
 0xb43   :  { %1983 = vmatpush3.xpose.msk.msra.mxu1 %vm207_vm1, %v2252_v9 }
 0xb44   :  { %1984 = vmatprep.subr.mxu1 %v2154_v3 }
 0xb47   :  { %1985 = vmatpush3.xpose.msk.msra.mxu1 %vm207_vm1, %v2266_v11 }
 0xb48   :  { %1986 = vmatprep.subr.mxu1 %v2154_v3 }
 0xb4b   :  { %1987 = vmatpush3.xpose.msk.msra.mxu1 %vm207_vm1, %v2279_v13 }
 0xb4c   :  { %1988 = vmatprep.subr.mxu1 %v2154_v3 }
 0xb4f   :  { %1989 = vmatpush3.xpose.msk.msra.mxu1 %vm207_vm1, %v2292_v15 }
 0xb50   :  { %1990 = vmatprep.subr.mxu1 %v2154_v3 }
 0xb53   :  { %1991 = vmatpush3.xpose.msk.msra.mxu1 %vm207_vm1, %v2305_v17 }
 0xb54   :  { %1992 = vmatprep.subr.mxu1 %v2154_v3 }
 0xb57   :  { %1993 = vmatpush3.xpose.msk.msra.mxu1 %vm207_vm1, %v2318_v19 }
 0xb58   :  { %1994 = vmatprep.subr.mxu1 %v2154_v3 }
 0xb5b   :  { %1995 = vmatpush3.xpose.msk.msra.mxu1 %vm207_vm1, %v2331_v21 }
 0xb5c   :  { %1996 = vmatprep.subr.mxu1 %v2154_v3 }
 0xb5f   :  { %1997 = vmatpush3.xpose.msk.msra.mxu1 %vm207_vm1, %v2344_v23 }
 0xb60   :  { %1998 = vmatprep.subr.mxu1 %v2154_v3 }
 0xb63   :  { %1999 = vmatpush3.xpose.msk.msra.mxu1 %vm207_vm1, %v2357_v25 }
 0xb64   :  { %2000 = vmatprep.subr.mxu1 %v2154_v3 }
 0xb67   :  { %2001 = vmatpush3.xpose.msk.msra.mxu1 %vm207_vm1, %v2370_v27 }
 0xb68   :  { %2002 = vmatprep.subr.mxu1 %v2154_v3 }
 0xb6b   :  { %2003 = vmatpush3.xpose.msk.msra.mxu1 %vm207_vm1, %v2383_v29 }
 0xb6c   :  { %2004 = vmatprep.subr.mxu1 %v2154_v3 }
 0xb6f   :  { %2005 = vmatpush3.xpose.msk.msra.mxu1 %vm207_vm1, %v2396_v31 }
 0xb70   :  { %2006 = vmatprep.subr.mxu1 %v2154_v3 }
 0xb73   :  { %2007 = vmatpush3.xpose.msk.msra.mxu1 %vm207_vm1, %v2409_v33 }
 0xb74   :  { %2046 = vmatprep.subr.mxu1 %v2154_v3 }
 0xbf6   :  { %v852_v1 = vpop.f32.mrf.mxu1 }
 0xbf7   :  { %v857_v4 = vrot.slane %v852_v1, 4  ;;  %v858_v6 = vrot.slane %v852_v1, 5 }
 0xbf8   :  { %v1940_v9 = vpop.f32.mrf.mxu1 }
 0xbf9   :  { %v861_v11 = vadd.f32 %v857_v4, %v2538_v53  ;;  %v862_v13 = vadd.f32 %v858_v6, %v2531_v46 }
 0xbfb   :  { %v863_v15 = vmul.f32 %v861_v11, %v2535_v49  ;;  %v864_v17 = vmul.f32 %v862_v13, %v2535_v49 }
 0xbfd   :  { %2089 = vtanh.f32 %v863_v15 }
 0xbfe   :  { %2091 = vtanh.f32 %v864_v17 }
 0xc0a   :  { %v2090_v19 = vpop.eup %2089 }
 0xc0b   :  { %v2092_v21 = vpop.eup %2091  ;;  %v867_v23 = vmul.f32 %v2090_v19, %v2535_v49 }
 0xc0c   :  { %v868_v60 = vmul.f32 %v2092_v21, %v2535_v49 }
 0xc0d   :  { %v869_v61 = vadd.f32 %v867_v23, %v2545_v58 }
 0xc0e   :  { %v870_v62 = vadd.f32 %v868_v60, %v2545_v58 }
 0xc0f   :  { %881 = vrot.lane.b32.xlu0 %v869_v61, %s2157_s3  ;;  %v877_v10 = vmul.f32 %v873_v7, %v869_v61 }
 0xc10   :  { %883 = vrot.lane.b32.xlu1 %v870_v62, %s2157_s3  ;;  %v878_v12 = vmul.f32 %v874_v8, %v870_v62 }
 0xc81   :  { %v882_v63 = vpop.permute.xlu0 %881 }
 0xc82   :  { %v884_v0 = vpop.permute.xlu1 %883  ;;  %v887_v2 = vmul.f32 %v882_v63, %v869_v61 }
 0xc83   :  { %v888_v5 = vmul.f32 %v884_v0, %v870_v62 }
 0xc84   :  { %891 = vrot.lane.b32.xlu0 %v887_v2, %s2158_s4 }
 0xc85   :  { %893 = vrot.lane.b32.xlu1 %v888_v5, %s2158_s4 }
 0xcf6   :  { %v892_v14 = vpop.permute.xlu0 %891 }
 0xcf7   :  { %v894_v16 = vpop.permute.xlu1 %893  ;;  %v2855_v18 = vadd.f32 %v892_v14, %v877_v10 }
 0xcf8   :  { %v2857_v20 = vadd.f32 %v894_v16, %v878_v12 }
 0xcf9   :  { %2093 = vtanh.f32 %v2855_v18  ;;  %v1007_v15 = vrot.slane %v2855_v18, 7 }
 0xcfa   :  { %2095 = vtanh.f32 %v2857_v20  ;;  %v1008_v17 = vrot.slane %v2857_v20, 7 }
 0xd06   :  { %v2094_v22 = vpop.eup %2093 }
 0xd07   :  { %v2096_v24 = vpop.eup %2095  ;;  %903 = vrot.lane.b32.xlu0 %v2094_v22, %s2157_s3 }
 0xd08   :  { %905 = vrot.lane.b32.xlu1 %v2096_v24, %s2157_s3 }
 0xd79   :  { %v904_v26 = vpop.permute.xlu0 %903 }
 0xd7a   :  { %v906_v28 = vpop.permute.xlu1 %905  ;;  %v909_v30 = vmul.f32 %v904_v26, %v869_v61 }
 0xd7b   :  { %v910_v32 = vmul.f32 %v906_v28, %v870_v62 }
 0xd7c   :  { %v913_v34 = vrot.slane %v909_v30, 4 }
 0xd7d   :  { %v914_v35 = vrot.slane %v910_v32, 3 }
 0xd7f   :  { %v915_v36 = vsel %vm380_vm6, %v914_v35, %v913_v34 }
 0xd80   :  { %916 = vrot.lane.b32.xlu0 %v915_v36, %s2158_s4 }
 0xdf2   :  { %v917_v37 = vpop.permute.xlu0 %916 }
 0xdf3   :  { %1974 = vmatmul.mubr.msk.f32.vlgmr.msra.gmra.mxu0 %vm207_vm1, %v917_v37 }
 0xdf4   :  { %2012 = vmatpush3.xpose.msk.msra.mxu0 %vm207_vm1, %v2121_v38  ;;  %2043 = vmatprep.mubr.msk.f32.mxu0 %vm2155_vm2, %v2154_v3 }
 0xdf5   :  { %2013 = vmatprep.subr.mxu0 %v2154_v3 }
 0xdf8   :  { %2014 = vmatpush3.xpose.msk.msra.mxu0 %vm207_vm1, %v2122_v39 }
 0xdf9   :  { %2015 = vmatprep.subr.mxu0 %v2154_v3 }
 0xdfc   :  { %2016 = vmatpush3.xpose.msk.msra.mxu0 %vm207_vm1, %v2123_v40 }
 0xdfd   :  { %2017 = vmatprep.subr.mxu0 %v2154_v3 }
 0xe00   :  { %2018 = vmatpush3.xpose.msk.msra.mxu0 %vm207_vm1, %v2124_v41 }
 0xe01   :  { %2019 = vmatprep.subr.mxu0 %v2154_v3 }
 0xe04   :  { %2020 = vmatpush3.xpose.msk.msra.mxu0 %vm207_vm1, %v2125_v42 }
 0xe05   :  { %2021 = vmatprep.subr.mxu0 %v2154_v3 }
 0xe08   :  { %2022 = vmatpush3.xpose.msk.msra.mxu0 %vm207_vm1, %v2126_v43 }
 0xe09   :  { %2023 = vmatprep.subr.mxu0 %v2154_v3 }
 0xe0c   :  { %2024 = vmatpush3.xpose.msk.msra.mxu0 %vm207_vm1, %v2127_v44 }
 0xe0d   :  { %2025 = vmatprep.subr.mxu0 %v2154_v3 }
 0xe10   :  { %2026 = vmatpush3.xpose.msk.msra.mxu0 %vm207_vm1, %v2128_v45 }
 0xe11   :  { %2027 = vmatprep.subr.mxu0 %v2154_v3 }
 0xe14   :  { %2028 = vmatpush3.xpose.msk.msra.mxu0 %vm207_vm1, %v2129_v47 }
 0xe15   :  { %2029 = vmatprep.subr.mxu0 %v2154_v3 }
 0xe18   :  { %2030 = vmatpush3.xpose.msk.msra.mxu0 %vm207_vm1, %v2130_v48 }
 0xe19   :  { %2031 = vmatprep.subr.mxu0 %v2154_v3 }
 0xe1c   :  { %2032 = vmatpush3.xpose.msk.msra.mxu0 %vm207_vm1, %v2131_v50 }
 0xe1d   :  { %2033 = vmatprep.subr.mxu0 %v2154_v3 }
 0xe20   :  { %2034 = vmatpush3.xpose.msk.msra.mxu0 %vm207_vm1, %v2357_v25 }
 0xe21   :  { %2035 = vmatprep.subr.mxu0 %v2154_v3 }
 0xe24   :  { %2036 = vmatpush3.xpose.msk.msra.mxu0 %vm207_vm1, %v2370_v27 }
 0xe25   :  { %2037 = vmatprep.subr.mxu0 %v2154_v3 }
 0xe28   :  { %2038 = vmatpush3.xpose.msk.msra.mxu0 %vm207_vm1, %v2383_v29 }
 0xe29   :  { %2039 = vmatprep.subr.mxu0 %v2154_v3 }
 0xe2c   :  { %2040 = vmatpush3.xpose.msk.msra.mxu0 %vm207_vm1, %v2396_v31 }
 0xe2d   :  { %2041 = vmatprep.subr.mxu0 %v2154_v3 }
 0xe30   :  { %2042 = vmatpush3.xpose.msk.msra.mxu0 %vm207_vm1, %v2409_v33 }
 0xeb3   :  { %v986_v25 = vpop.f32.mrf.mxu0 }
 0xeb4   :  { %v991_v51 = vrot.slane %v986_v25, 3  ;;  %v992_v52 = vrot.slane %v986_v25, 4 }
 0xeb5   :  { %v1975_v54 = vpop.f32.mrf.mxu0 }
 0xeb6   :  { %v995_v27 = vadd.f32 %v991_v51, %v2538_v53  ;;  %v996_v55 = vadd.f32 %v992_v52, %v2531_v46 }
 0xeb8   :  { %v997_v29 = vmul.f32 %v995_v27, %v2535_v49  ;;  %v998_v56 = vmul.f32 %v996_v55, %v2535_v49 }
 0xeba   :  { %2097 = vtanh.f32 %v997_v29 }
 0xebb   :  { %2099 = vtanh.f32 %v998_v56 }
 0xec7   :  { %v2098_v31 = vpop.eup %2097 }
 0xec8   :  { %v2100_v57 = vpop.eup %2099  ;;  %v1001_v59 = vmul.f32 %v2098_v31, %v2535_v49 }
 0xec9   :  { %v1002_v33 = vmul.f32 %v2100_v57, %v2535_v49 }
 0xeca   :  { %v1003_v1 = vadd.f32 %v1001_v59, %v2545_v58 }
 0xecb   :  { %v1004_v4 = vadd.f32 %v1002_v33, %v2545_v58 }
 0xecc   :  { %1015 = vrot.lane.b32.xlu1 %v1003_v1, %s2157_s3  ;;  %v1011_v19 = vmul.f32 %v1007_v15, %v1003_v1 }
 0xecd   :  { %1017 = vrot.lane.b32.xlu0 %v1004_v4, %s2157_s3  ;;  %v1012_v21 = vmul.f32 %v1008_v17, %v1004_v4 }
 0xf3e   :  { %v1016_v6 = vpop.permute.xlu1 %1015 }
 0xf3f   :  { %v1018_v9 = vpop.permute.xlu0 %1017  ;;  %v1021_v11 = vmul.f32 %v1016_v6, %v1003_v1 }
 0xf40   :  { %v1022_v13 = vmul.f32 %v1018_v9, %v1004_v4 }
 0xf41   :  { %1025 = vrot.lane.b32.xlu1 %v1021_v11, %s2158_s4 }
 0xf42   :  { %1027 = vrot.lane.b32.xlu0 %v1022_v13, %s2158_s4 }
 0xfb3   :  { %v1026_v23 = vpop.permute.xlu1 %1025 }
 0xfb4   :  { %v1028_v60 = vpop.permute.xlu0 %1027  ;;  %v1031_v61 = vadd.f32 %v1026_v23, %v1011_v19 }
 0xfb5   :  { %v1032_v62 = vadd.f32 %v1028_v60, %v1012_v21 }
 0xfb6   :  { %2101 = vtanh.f32 %v1031_v61  ;;  %v1141_v43 = vrot.slane %v1031_v61, 7 }
 0xfb7   :  { %2103 = vtanh.f32 %v1032_v62  ;;  %v1142_v44 = vrot.slane %v1032_v62, 7 }
 0xfc3   :  { %v2102_v63 = vpop.eup %2101 }
 0xfc4   :  { %v2104_v0 = vpop.eup %2103  ;;  %1037 = vrot.lane.b32.xlu1 %v2102_v63, %s2157_s3 }
 0xfc5   :  { %1039 = vrot.lane.b32.xlu0 %v2104_v0, %s2157_s3 }
0x1036   :  { %v1038_v2 = vpop.permute.xlu1 %1037 }
0x1037   :  { %v1040_v5 = vpop.permute.xlu0 %1039  ;;  %v1043_v7 = vmul.f32 %v1038_v2, %v1003_v1 }
0x1038   :  { %v1044_v8 = vmul.f32 %v1040_v5, %v1004_v4 }
0x1039   :  { %v1047_v10 = vrot.slane %v1043_v7, 5 }
0x103a   :  { %v1048_v12 = vrot.slane %v1044_v8, 4 }
0x103c   :  { %v1049_v14 = vsel %vm380_vm6, %v1048_v12, %v1047_v10 }
0x103d   :  { %1050 = vrot.lane.b32.xlu1 %v1049_v14, %s2158_s4  ;;  %v1313_v14 = vld [vmem:[%s3007_s5] sm:$0x3] }
0x10af   :  { %v1051_v16 = vpop.permute.xlu1 %1050 }
0x10b0   :  { %2009 = vmatmul.mubr.msk.f32.vlgmr.msra.gmra.mxu1 %vm207_vm1, %v1051_v16 }
0x10b1   :  { %2048 = vmatprep.mubr.msk.f32.mxu1 %vm2155_vm2, %v2154_v3  ;;  %2047 = vmatpush3.xpose.msk.msra.mxu1 %vm207_vm1, %v1313_v14 }
0x1170   :  { %v1120_v18 = vpop.f32.mrf.mxu1 }
0x1171   :  { %v1125_v20 = vrot.slane %v1120_v18, 2  ;;  %v1126_v22 = vrot.slane %v1120_v18, 3 }
0x1172   :  { %v2010_v24 = vpop.f32.mrf.mxu1 }
0x1173   :  { %v1129_v26 = vadd.f32 %v1125_v20, %v2538_v53  ;;  %v1130_v28 = vadd.f32 %v1126_v22, %v2531_v46 }
0x1175   :  { %v1131_v30 = vmul.f32 %v1129_v26, %v2535_v49  ;;  %v1132_v32 = vmul.f32 %v1130_v28, %v2535_v49 }
0x1177   :  { %2105 = vtanh.f32 %v1131_v30 }
0x1178   :  { %2107 = vtanh.f32 %v1132_v32 }
0x1184   :  { %v2106_v34 = vpop.eup %2105 }
0x1185   :  { %v2108_v35 = vpop.eup %2107  ;;  %v1135_v36 = vmul.f32 %v2106_v34, %v2535_v49 }
0x1186   :  { %v1136_v3 = vmul.f32 %v2108_v35, %v2535_v49  ;;  %v1572_v35 = vld [vmem:[%s3008_s6] ss:$0 sm:$0xff] }
0x1187   :  { %v1137_v37 = vadd.f32 %v1135_v36, %v2545_v58 }
0x1188   :  { %v1138_v38 = vadd.f32 %v1136_v3, %v2545_v58 }
0x1189   :  { %1149 = vrot.lane.b32.xlu0 %v1137_v37, %s2157_s3  ;;  %v1145_v45 = vmul.f32 %v1141_v43, %v1137_v37 }
0x118a   :  { %1151 = vrot.lane.b32.xlu1 %v1138_v38, %s2157_s3  ;;  %v1146_v47 = vmul.f32 %v1142_v44, %v1138_v38 }
0x11fb   :  { %v1150_v39 = vpop.permute.xlu0 %1149 }
0x11fc   :  { %v1152_v40 = vpop.permute.xlu1 %1151  ;;  %v1155_v41 = vmul.f32 %v1150_v39, %v1137_v37 }
0x11fd   :  { %v1156_v42 = vmul.f32 %v1152_v40, %v1138_v38 }
0x11fe   :  { %1159 = vrot.lane.b32.xlu0 %v1155_v41, %s2158_s4 }
0x11ff   :  { %1161 = vrot.lane.b32.xlu1 %v1156_v42, %s2158_s4 }
0x1270   :  { %v1160_v48 = vpop.permute.xlu0 %1159 }
0x1271   :  { %v1162_v50 = vpop.permute.xlu1 %1161  ;;  %v1165_v25 = vadd.f32 %v1160_v48, %v1145_v45 }
0x1272   :  { %v1166_v51 = vadd.f32 %v1162_v50, %v1146_v47 }
0x1273   :  { %2109 = vtanh.f32 %v1165_v25  ;;  %v1275_v2 = vrot.slane %v1165_v25, 7 }
0x1274   :  { %2111 = vtanh.f32 %v1166_v51  ;;  %v1276_v5 = vrot.slane %v1166_v51, 7 }
0x1280   :  { %v2110_v52 = vpop.eup %2109 }
0x1281   :  { %v2112_v54 = vpop.eup %2111  ;;  %1171 = vrot.lane.b32.xlu0 %v2110_v52, %s2157_s3 }
0x1282   :  { %1173 = vrot.lane.b32.xlu1 %v2112_v54, %s2157_s3 }
0x12f3   :  { %v1172_v27 = vpop.permute.xlu0 %1171 }
0x12f4   :  { %v1174_v55 = vpop.permute.xlu1 %1173  ;;  %v1177_v29 = vmul.f32 %v1172_v27, %v1137_v37 }
0x12f5   :  { %v1178_v56 = vmul.f32 %v1174_v55, %v1138_v38 }
0x12f6   :  { %v1181_v31 = vrot.slane %v1177_v29, 6 }
0x12f7   :  { %v1182_v57 = vrot.slane %v1178_v56, 5 }
0x12f9   :  { %v1183_v59 = vsel %vm380_vm6, %v1182_v57, %v1181_v31 }
0x12fa   :  { %1184 = vrot.lane.b32.xlu0 %v1183_v59, %s2158_s4 }
0x136c   :  { %v1185_v33 = vpop.permute.xlu0 %1184 }
0x136d   :  { %2044 = vmatmul.mubr.msk.f32.vlgmr.msra.gmra.mxu0 %vm207_vm1, %v1185_v33 }
0x142d   :  { %v1254_v1 = vpop.f32.mrf.mxu0 }
0x142e   :  { %v1259_v4 = vrot.slane %v1254_v1, 1  ;;  %v1260_v6 = vrot.slane %v1254_v1, 2 }
0x142f   :  { %v2045_v9 = vpop.f32.mrf.mxu0 }
0x1430   :  { %v1263_v11 = vadd.f32 %v1259_v4, %v2538_v53  ;;  %v1264_v13 = vadd.f32 %v1260_v6, %v2531_v46 }
0x1432   :  { %v1265_v15 = vmul.f32 %v1263_v11, %v2535_v49  ;;  %v1266_v17 = vmul.f32 %v1264_v13, %v2535_v49 }
0x1434   :  { %2113 = vtanh.f32 %v1265_v15 }
0x1435   :  { %2115 = vtanh.f32 %v1266_v17 }
0x1441   :  { %v2114_v19 = vpop.eup %2113 }
0x1442   :  { %v2116_v21 = vpop.eup %2115  ;;  %v1269_v23 = vmul.f32 %v2114_v19, %v2535_v49 }
0x1443   :  { %v1270_v60 = vmul.f32 %v2116_v21, %v2535_v49 }
0x1444   :  { %v1271_v61 = vadd.f32 %v1269_v23, %v2545_v58 }
0x1445   :  { %v1272_v62 = vadd.f32 %v1270_v60, %v2545_v58 }
0x1446   :  { %1283 = vrot.lane.b32.xlu1 %v1271_v61, %s2157_s3  ;;  %v1279_v7 = vmul.f32 %v1275_v2, %v1271_v61 }
0x1447   :  { %1285 = vrot.lane.b32.xlu0 %v1272_v62, %s2157_s3  ;;  %v1280_v49 = vmul.f32 %v1276_v5, %v1272_v62 }
0x14b8   :  { %v1284_v46 = vpop.permute.xlu1 %1283 }
0x14b9   :  { %v1286_v53 = vpop.permute.xlu0 %1285  ;;  %v1289_v63 = vmul.f32 %v1284_v46, %v1271_v61 }
0x14ba   :  { %v1290_v0 = vmul.f32 %v1286_v53, %v1272_v62 }
0x14bb   :  { %1293 = vrot.lane.b32.xlu1 %v1289_v63, %s2158_s4 }
0x14bc   :  { %1295 = vrot.lane.b32.xlu0 %v1290_v0, %s2158_s4 }
0x152d   :  { %v1294_v8 = vpop.permute.xlu1 %1293 }
0x152e   :  { %v1296_v10 = vpop.permute.xlu0 %1295  ;;  %v1299_v12 = vadd.f32 %v1294_v8, %v1279_v7 }
0x152f   :  { %v1300_v58 = vadd.f32 %v1296_v10, %v1280_v49 }
0x1530   :  { %2117 = vtanh.f32 %v1299_v12 }
0x1531   :  { %2119 = vtanh.f32 %v1300_v58 }
0x153d   :  { %v2118_v16 = vpop.eup %2117 }
0x153e   :  { %v2120_v18 = vpop.eup %2119  ;;  %1305 = vrot.lane.b32.xlu1 %v2118_v16, %s2157_s3 }
0x153f   :  { %1307 = vrot.lane.b32.xlu0 %v2120_v18, %s2157_s3  ;;  %s2132_s3 = scalar_lea.vmem %s1412_s25, 32 }
0x1540   :  { %p2133_p0 = scmp.ne.s32.totalorder %s1412_s25, %s2132_s3  ;;  %p2138_p2 = scmp.lt.s32.totalorder %s2132_s3, %s2132_s3 }
0x1542   :  { %p2139_p3 = por %p2138_p2, %p2137_p1 }
0x1544   :  { %p2140_p4 = pnand %p2139_p3, %p2133_p0 }
0x15b0   :  { %v1306_v20 = vpop.permute.xlu1 %1305 }
0x15b1   :  { %v1308_v22 = vpop.permute.xlu0 %1307  ;;  %v1311_v24 = vmul.f32 %v1306_v20, %v1271_v61 }
0x15b2   :  { %v1312_v26 = vmul.f32 %v1308_v22, %v1272_v62 }
0x15b3   :  { %v1323_v28 = vrot.slane %v1311_v24, 7 }
0x15b4   :  { %v1324_v30 = vrot.slane %v1312_v26, 6 }
0x15b6   :  { %v1325_v32 = vsel %vm380_vm6, %v1324_v30, %v1323_v28 }
0x15b7   :  { %1326 = vrot.lane.b32.xlu1 %v1325_v32, %s2158_s4 }
0x1629   :  { %v1327_v34 = vpop.permute.xlu1 %1326 }
0x162a   :  { %2049 = vmatmul.mubr.msk.f32.vlgmr.msra.gmra.mxu1 %vm207_vm1, %v1327_v34 }
0x16ea   :  { %v1399_v36 = vpop.f32.mrf.mxu1 }
0x16eb   :  { %v1400_v3 = vadd.f32 %v1572_v35, %v1399_v36 }
0x16ec   :  { %v2050_v37 = vpop.f32.mrf.mxu1 }
0x16ed   :  { %1404 = vst.msk [vmem:[#allocation2] sm:$0x3] %vm1403_vm7, %v1400_v3 }
0x16ee   :  { %2143 = shalt.err (!%p2140_p4)
}
0x16ef   :  { %1414 = dma.vmem_to_hbm [thread:$0]  %s1412_s25, 32, %s3009_s7, [#allocation3]  }
0x16f0   :  { %2152 = dma.done.wait [#allocation3], 32  }
0x16f1   :  { %2153 = vsyncadd [#allocation3], 4294967264 }
0x16f2   :  { %1418 = vsyncpa [#allocation3], 1 }

</bundles_post_ra>
